<compile_context>
chip_gen: v7x
topology: tpu7x:2x2x1
jax: 0.10.0
libtpu: 0.0.40
codegen_flags: <defaults>
</compile_context>

<pallas_src>
import jax
import jax.numpy as jnp
from jax import lax
from jax.experimental import pallas as pl
from jax.experimental.pallas import tpu as pltpu


LANE = 128
SUBLANE = 8


# ----------------------------- helpers ---------------------------------------

def _round_up(x, m):
    return (x + m - 1) // m * m


def _pad2d(a, rows, cols):
    return jnp.pad(a, ((0, rows - a.shape[0]), (0, cols - a.shape[1])))


def _vmem_budget():
    """Scoped-VMEM limit: ~3/4 of this generation's physical VMEM
    (=> ~48 MiB on v7x's 64 MiB/TC, ~96 MiB on the 128 MiB v5e/v6e)."""
    try:
        cap = int(pltpu.get_tpu_info().vmem_capacity_bytes)
        if cap <= 0:
            cap = 64 * 1024 * 1024
    except Exception:
        cap = 64 * 1024 * 1024          # conservative: fits every generation
    return int(min(cap * 3 // 4, 96 * 1024 * 1024))


def _choose_tile_rows(n_rows, fp, hp, op, el, vmem_budget):
    """Largest MXU-friendly row tile whose fused-GC working set fits the budget:
    2x-buffered qx/output slabs + ~2 f32 copies of the recomputed (tm x N)
    adjacency slab per step, plus the single-buffered residents (kx, s, w)."""
    wide = max(hp, op)
    resident = el * (n_rows * (fp + wide) + fp * wide) + 4 * wide
    avail = max(vmem_budget - resident - (2 << 20), 1 << 20)
    per_row = 2 * el * (fp + wide) + 2 * 4 * n_rows
    tm = min(512, n_rows, int(avail // per_row))
    if tm >= 256:
        tm = (tm // 256) * 256          # fill the 256-wide MXU M dim (v6e/v7x)
    tm = max(SUBLANE, (tm // SUBLANE) * SUBLANE)
    # keep >=2 grid steps so the "parallel" axis can shard over v7x's 2 cores
    if tm > n_rows // 2:
        tm = max(SUBLANE, (n_rows // 2) // SUBLANE * SUBLANE)
    return tm


# ----------------------------- kernels ----------------------------------------

def _make_prep_kernel(tm, n_valid):
    """qx = x @ Wq^T + bq ; kx = mask(x @ Wk^T + bk) ; s1 = x @ w1 (row-parallel).
    Operands arrive already in their storage dtype — no per-step casts."""
    def prep_kernel(x_ref, wqt_ref, bq_ref, wkt_ref, bk_ref, w1_ref,
                    qx_ref, kx_ref, s1_ref):
        x = x_ref[...]
        qx = jnp.dot(x, wqt_ref[...],
                     preferred_element_type=jnp.float32) + bq_ref[...]
        kx = jnp.dot(x, wkt_ref[...],
                     preferred_element_type=jnp.float32) + bk_ref[...]
        # Zero padded node rows of kx: with real (non-zero) bk they would make
        # padded adjacency columns non-zero, inflating every real row's L1
        # denominator and letting padded support rows leak into real rows.
        row = pl.program_id(0) * tm + lax.broadcasted_iota(jnp.int32, (tm, 1), 0)
        kx = jnp.where(row < n_valid, kx, 0.0)
        qx_ref[...] = qx.astype(qx_ref.dtype)
        kx_ref[...] = kx.astype(kx_ref.dtype)
        s1_ref[...] = jnp.dot(x, w1_ref[...],
                              preferred_element_type=jnp.float32
                              ).astype(s1_ref.dtype)
    return prep_kernel


def _adj_slab(qx, kx, approx_recip):
    """(tm x N) slab of L1-normalize((qx @ kx^T)^2, dim=-1); reductions and the
    normalization in f32.  Reciprocal-multiply instead of a full-slab divide."""
    dot = lax.dot_general(qx, kx, (((1,), (1,)), ((), ())),
                          preferred_element_type=jnp.float32)
    sq = dot * dot
    denom = jnp.maximum(jnp.sum(sq, axis=-1, keepdims=True), 1e-12)
    inv = pl.reciprocal(denom, approx=True) if approx_recip else 1.0 / denom
    return sq * inv


def _make_gc_next_kernel(mm_dtype, approx_recip):
    """s_next_blk = relu(adj_blk @ s + b) @ w_next, adj_blk recomputed in VMEM."""
    def gc_next_kernel(qx_ref, kx_ref, s_ref, b_ref, wn_ref, s_next_ref):
        adj = _adj_slab(qx_ref[...], kx_ref[...], approx_recip).astype(mm_dtype)
        agg = jnp.dot(adj, s_ref[...], preferred_element_type=jnp.float32)
        h = jnp.maximum(agg + b_ref[...], 0.0)               # bias + ReLU in f32
        s_next_ref[...] = jnp.dot(h.astype(mm_dtype), wn_ref[...],
                                  preferred_element_type=jnp.float32
                                  ).astype(s_next_ref.dtype)
    return gc_next_kernel


def _make_gc_final_kernel(mm_dtype, approx_recip):
    """out_blk = relu(adj_blk @ s + b), adj_blk recomputed in VMEM."""
    def gc_final_kernel(qx_ref, kx_ref, s_ref, b_ref, out_ref):
        adj = _adj_slab(qx_ref[...], kx_ref[...], approx_recip).astype(mm_dtype)
        agg = jnp.dot(adj, s_ref[...], preferred_element_type=jnp.float32)
        out_ref[...] = jnp.maximum(agg + b_ref[...], 0.0).astype(out_ref.dtype)
    return gc_final_kernel


# ----------------------------- wrapper -----------------------------------------

def _gcn_forward(x, params, *, mm_dtype, tile_rows, single_buffer_residents):
    n, in_feat = x.shape
    nhid = params["w1"].shape[1]
    out_feat = params["w3"].shape[1]
    el = jnp.dtype(mm_dtype).itemsize
    f32 = jnp.float32

    # lane-pad feature dims, sublane/tile-pad the node dim
    fp = _round_up(in_feat, LANE)
    hp = _round_up(nhid, LANE)
    op = _round_up(out_feat, LANE)

    n0 = _round_up(n, SUBLANE)
    vmem_budget = _vmem_budget()
    tm = (_choose_tile_rows(n0, fp, hp, op, el, vmem_budget)
          if tile_rows is None else tile_rows)
    tm = max(SUBLANE, min((tm // SUBLANE) * SUBLANE, n0))
    np_ = _round_up(n0, tm)
    grid = (np_ // tm,)

    # one-time wrapper-side padding / transposition / dtype cast
    x_p = _pad2d(x, np_, fp).astype(mm_dtype)
    # nn.Linear stores (out, in): pre-transpose once; kernels do plain x @ W_t.
    wq_t = _pad2d(params["wq"].T, fp, fp).astype(mm_dtype)
    wk_t = _pad2d(params["wk"].T, fp, fp).astype(mm_dtype)
    w1 = _pad2d(params["w1"], fp, hp).astype(mm_dtype)
    w2 = _pad2d(params["w2"], hp, hp).astype(mm_dtype)
    w3 = _pad2d(params["w3"], hp, op).astype(mm_dtype)
    bq = _pad2d(params["bq"].reshape(1, -1), 1, fp).astype(f32)
    bk = _pad2d(params["bk"].reshape(1, -1), 1, fp).astype(f32)
    b1 = _pad2d(params["b1"].reshape(1, -1), 1, hp).astype(f32)
    b2 = _pad2d(params["b2"].reshape(1, -1), 1, hp).astype(f32)
    b3 = _pad2d(params["b3"].reshape(1, -1), 1, op).astype(f32)

    cp = pltpu.CompilerParams(dimension_semantics=("parallel",),
                              vmem_limit_bytes=vmem_budget)
    approx_recip = jnp.dtype(mm_dtype) == jnp.dtype(jnp.bfloat16)

    def row_spec(cols):
        return pl.BlockSpec((tm, cols), lambda i: (i, 0))

    def res_spec(rows, cols):
        # Constant block index across the whole grid: single-buffer it (default
        # 2-deep pipelining would only double the residents' VMEM footprint).
        if single_buffer_residents:
            return pl.BlockSpec((rows, cols), lambda i: (0, 0),
                                pipeline_mode=pl.Buffered(1))
        return pl.BlockSpec((rows, cols), lambda i: (0, 0))

    # --- call 1: qx, kx (padded rows masked), s1 = x @ w1 ------------------------
    qx, kx, s1 = pl.pallas_call(
        _make_prep_kernel(tm, n),
        grid=grid,
        in_specs=[row_spec(fp), res_spec(fp, fp), res_spec(1, fp),
                  res_spec(fp, fp), res_spec(1, fp), res_spec(fp, hp)],
        out_specs=[row_spec(fp), row_spec(fp), row_spec(hp)],
        out_shape=[jax.ShapeDtypeStruct((np_, fp), mm_dtype),
                   jax.ShapeDtypeStruct((np_, fp), mm_dtype),
                   jax.ShapeDtypeStruct((np_, hp), mm_dtype)],
        compiler_params=cp,
        cost_estimate=pl.CostEstimate(
            flops=2 * np_ * fp * (2 * fp + hp), transcendentals=0,
            bytes_accessed=el * (np_ * (3 * fp + hp) + fp * (2 * fp + hp))
                           + 4 * 2 * fp),
    )(x_p, wq_t, bq, wk_t, bk, w1)

    # --- calls 2/3: fused adj-recompute + aggregate + ReLU + next-layer support --
    def gc_next(s, b, w_next, f_in, f_out):
        return pl.pallas_call(
            _make_gc_next_kernel(mm_dtype, approx_recip),
            grid=grid,
            in_specs=[row_spec(fp), res_spec(np_, fp), res_spec(np_, f_in),
                      res_spec(1, f_in), res_spec(f_in, f_out)],
            out_specs=row_spec(f_out),
            out_shape=jax.ShapeDtypeStruct((np_, f_out), mm_dtype),
            compiler_params=cp,
            cost_estimate=pl.CostEstimate(
                flops=np_ * np_ * (2 * fp + 2 * f_in + 4)
                      + 2 * np_ * f_in * f_out,
                transcendentals=0,
                bytes_accessed=el * (np_ * (2 * fp + f_in + f_out)
                                     + f_in * f_out) + 4 * f_in),
        )(qx, kx, s, b, w_next)

    s2 = gc_next(s1, b1, w2, hp, hp)   # layer-1 aggregate -> layer-2 support
    s3 = gc_next(s2, b2, w3, hp, op)   # layer-2 aggregate -> layer-3 support

    # --- call 4: final fused layer, lane-dense (>=128) f32 output slab -----------
    out_p = pl.pallas_call(
        _make_gc_final_kernel(mm_dtype, approx_recip),
        grid=grid,
        in_specs=[row_spec(fp), res_spec(np_, fp), res_spec(np_, op),
                  res_spec(1, op)],
        out_specs=row_spec(op),
        out_shape=jax.ShapeDtypeStruct((np_, op), jnp.float32),
        compiler_params=cp,
        cost_estimate=pl.CostEstimate(
            flops=np_ * np_ * (2 * fp + 2 * op + 4), transcendentals=0,
            bytes_accessed=el * np_ * (2 * fp + op) + 4 * (np_ * op + op)),
    )(qx, kx, s3, b3)

    return out_p[:n, :out_feat]


def gcn_forward(x, params, *, mm_dtype=jnp.float32, tile_rows=None):
    try:
        return _gcn_forward(x, params, mm_dtype=mm_dtype, tile_rows=tile_rows,
                            single_buffer_residents=True)
    except Exception:
        # pl.Buffered(1) on resident BlockSpecs is a pure VMEM optimisation;
        # fall back to default double-buffering if this JAX/Mosaic rejects it.
        return _gcn_forward(x, params, mm_dtype=mm_dtype, tile_rows=tile_rows,
                            single_buffer_residents=False)


# ----------------------------- test harness ------------------------------------

def init_params(key, in_feat, nhid, out_feat):
    """Xavier-normal weights (gain=0.02 for GCN, 1.0 for the Feat2Graph linears).
    Biases are deliberately NON-zero (as in real checkpoints) so the padded-node
    masking in the prep kernel is actually exercised by the test."""
    def xavier(k, shape, gain):
        std = gain * (2.0 / (shape[0] + shape[1])) ** 0.5
        return std * jax.random.normal(k, shape, dtype=jnp.float32)

    ks = jax.random.split(key, 10)
    bound = 1.0 / in_feat ** 0.5
    return {
        # nn.Linear weights: (out_features, in_features), default-style biases
        "wq": xavier(ks[0], (in_feat, in_feat), 1.0),
        "bq": jax.random.uniform(ks[1], (1, in_feat), jnp.float32, -bound, bound),
        "wk": xavier(ks[2], (in_feat, in_feat), 1.0),
        "bk": jax.random.uniform(ks[3], (1, in_feat), jnp.float32, -bound, bound),
        # GraphConvolution weights: (in_features, out_features), xavier gain=0.02
        "w1": xavier(ks[4], (in_feat, nhid), 0.02),
        "b1": 0.01 * jax.random.normal(ks[5], (1, nhid), dtype=jnp.float32),
        "w2": xavier(ks[6], (nhid, nhid), 0.02),
        "b2": 0.01 * jax.random.normal(ks[7], (1, nhid), dtype=jnp.float32),
        "w3": xavier(ks[8], (nhid, out_feat), 0.02),
        "b3": 0.01 * jax.random.normal(ks[9], (1, out_feat), dtype=jnp.float32),
    }


def gcn_reference(x, p):
    """Pure-JAX reference mirroring the PyTorch forward exactly."""
    qx = x @ p["wq"].T + p["bq"]
    kx = x @ p["wk"].T + p["bk"]
    sq = (qx @ kx.T) ** 2
    adj = sq / jnp.maximum(jnp.sum(sq, axis=-1, keepdims=True), 1e-12)

    def gc(h, w, b):
        return jnp.maximum(adj @ (h @ w) + b, 0.0)

    h = gc(x, p["w1"], p["b1"])
    h = gc(h, p["w2"], p["b2"])
    h = gc(h, p["w3"], p["b3"])
    return h


if __name__ == "__main__":
    N, in_feat, nhid, out_feat = 40, 16, 32, 8

    key = jax.random.PRNGKey(0)
    kx_, kp = jax.random.split(key)
    x = jax.random.normal(kx_, (N, in_feat), dtype=jnp.float32)
    params = init_params(kp, in_feat, nhid, out_feat)

    ref = gcn_reference(x, params)

    # strict f32 path, auto tile (N=40 -> 48 padded rows, 2-step "parallel" grid);
    # non-zero bq/bk exercise the padded-row masking fix.
    out = jax.block_until_ready(gcn_forward(x, params))
    assert out.shape == (N, out_feat)
    assert jnp.allclose(out, ref, atol=1e-5, rtol=1e-5), \
        float(jnp.max(jnp.abs(out - ref)))

    # bf16 storage/MXU path (halved HBM traffic, f32 accumulation/normalization);
    # tile_rows=16 forces a 3-step grid with genuine row padding (40 -> 48).
    out_bf16 = jax.block_until_ready(
        gcn_forward(x, params, mm_dtype=jnp.bfloat16, tile_rows=16))
    assert out_bf16.shape == (N, out_feat)
    assert jnp.allclose(out_bf16, ref, atol=5e-2, rtol=5e-2), \
        float(jnp.max(jnp.abs(out_bf16 - ref)))

    print("KERNEL_OK")
</pallas_src>

<mosaic_0001>
module attributes {stable_mosaic.version = 11 : i64} {
  func.func @prep_kernel(%arg0: i32, %arg1: memref<16x128xf32, #tpu.memory_space<vmem>>, %arg2: memref<128x128xf32, #tpu.memory_space<vmem>>, %arg3: memref<1x128xf32, #tpu.memory_space<vmem>>, %arg4: memref<128x128xf32, #tpu.memory_space<vmem>>, %arg5: memref<1x128xf32, #tpu.memory_space<vmem>>, %arg6: memref<128x128xf32, #tpu.memory_space<vmem>>, %arg7: memref<16x128xf32, #tpu.memory_space<vmem>>, %arg8: memref<16x128xf32, #tpu.memory_space<vmem>>, %arg9: memref<16x128xf32, #tpu.memory_space<vmem>>) attributes {dimension_semantics = [#tpu.dimension_semantics<parallel>], iteration_bounds = array<i64: 3>, scalar_prefetch = 0 : i64, scratch_operands = 0 : i64, tpu.core_type = #tpu.core_type<tc>, window_params = [{transform_indices = @transform_0, window_bounds = array<i64: 16, 128>}, {pipeline_mode = #tpu.pipeline_mode<synchronous>, transform_indices = @transform_1, window_bounds = array<i64: 128, 128>}, {pipeline_mode = #tpu.pipeline_mode<synchronous>, transform_indices = @transform_2, window_bounds = array<i64: 1, 128>}, {pipeline_mode = #tpu.pipeline_mode<synchronous>, transform_indices = @transform_3, window_bounds = array<i64: 128, 128>}, {pipeline_mode = #tpu.pipeline_mode<synchronous>, transform_indices = @transform_4, window_bounds = array<i64: 1, 128>}, {pipeline_mode = #tpu.pipeline_mode<synchronous>, transform_indices = @transform_5, window_bounds = array<i64: 128, 128>}, {transform_indices = @transform_6, window_bounds = array<i64: 16, 128>}, {transform_indices = @transform_7, window_bounds = array<i64: 16, 128>}, {transform_indices = @transform_8, window_bounds = array<i64: 16, 128>}]} {
    %c0 = arith.constant 0 : index
    %c0_0 = arith.constant 0 : index
    %0 = vector.load %arg1[%c0, %c0_0] : memref<16x128xf32, #tpu.memory_space<vmem>>, vector<16x128xf32>
    %c0_1 = arith.constant 0 : index
    %c0_2 = arith.constant 0 : index
    %1 = vector.load %arg2[%c0_1, %c0_2] : memref<128x128xf32, #tpu.memory_space<vmem>>, vector<128x128xf32>
    %cst = arith.constant dense<0.000000e+00> : vector<16x128xf32>
    %2 = tpu.matmul %0, %1, %cst {dimension_numbers = #tpu.dot_dimension_numbers<[1], [0], [0], [1], [0, 0, 1, 1], [], []>} : vector<16x128xf32>, vector<128x128xf32>, vector<16x128xf32> -> vector<16x128xf32>
    %c0_3 = arith.constant 0 : index
    %c0_4 = arith.constant 0 : index
    %3 = vector.load %arg3[%c0_3, %c0_4] : memref<1x128xf32, #tpu.memory_space<vmem>>, vector<1x128xf32>
    %4 = vector.broadcast %3 : vector<1x128xf32> to vector<16x128xf32>
    %5 = arith.addf %2, %4 : vector<16x128xf32>
    %c0_5 = arith.constant 0 : index
    %c0_6 = arith.constant 0 : index
    %6 = vector.load %arg4[%c0_5, %c0_6] : memref<128x128xf32, #tpu.memory_space<vmem>>, vector<128x128xf32>
    %cst_7 = arith.constant dense<0.000000e+00> : vector<16x128xf32>
    %7 = tpu.matmul %0, %6, %cst_7 {dimension_numbers = #tpu.dot_dimension_numbers<[1], [0], [0], [1], [0, 0, 1, 1], [], []>} : vector<16x128xf32>, vector<128x128xf32>, vector<16x128xf32> -> vector<16x128xf32>
    %c0_8 = arith.constant 0 : index
    %c0_9 = arith.constant 0 : index
    %8 = vector.load %arg5[%c0_8, %c0_9] : memref<1x128xf32, #tpu.memory_space<vmem>>, vector<1x128xf32>
    %9 = vector.broadcast %8 : vector<1x128xf32> to vector<16x128xf32>
    %10 = arith.addf %7, %9 : vector<16x128xf32>
    %c16_i32 = arith.constant 16 : i32
    %11 = arith.muli %arg0, %c16_i32 : i32
    %12 = tpu.iota {dimensions = array<i32: 0>} : vector<16x1xi32>
    %13 = vector.broadcast %11 : i32 to vector<16x1xi32>
    %14 = arith.addi %13, %12 : vector<16x1xi32>
    %c40_i32 = arith.constant 40 : i32
    %15 = vector.broadcast %c40_i32 : i32 to vector<16x1xi32>
    %16 = arith.cmpi slt, %14, %15 : vector<16x1xi32>
    %cst_10 = arith.constant 0.000000e+00 : f32
    %17 = vector.shape_cast %16 : vector<16x1xi1> to vector<16x1xi1>
    %18 = vector.broadcast %17 : vector<16x1xi1> to vector<16x128xi1>
    %19 = vector.broadcast %cst_10 : f32 to vector<16x128xf32>
    %20 = arith.select %18, %10, %19 : vector<16x128xi1>, vector<16x128xf32>
    %c0_11 = arith.constant 0 : index
    %c0_12 = arith.constant 0 : index
    %21 = vector.load %arg7[%c0_11, %c0_12] : memref<16x128xf32, #tpu.memory_space<vmem>>, vector<16x128xf32>
    tpu.vector_store %arg7[%c0_11, %c0_12], %5 {strides = array<i32>} : memref<16x128xf32, #tpu.memory_space<vmem>>, vector<16x128xf32>,
    %c0_13 = arith.constant 0 : index
    %c0_14 = arith.constant 0 : index
    %22 = vector.load %arg8[%c0_13, %c0_14] : memref<16x128xf32, #tpu.memory_space<vmem>>, vector<16x128xf32>
    tpu.vector_store %arg8[%c0_13, %c0_14], %20 {strides = array<i32>} : memref<16x128xf32, #tpu.memory_space<vmem>>, vector<16x128xf32>,
    %c0_15 = arith.constant 0 : index
    %c0_16 = arith.constant 0 : index
    %23 = vector.load %arg6[%c0_15, %c0_16] : memref<128x128xf32, #tpu.memory_space<vmem>>, vector<128x128xf32>
    %cst_17 = arith.constant dense<0.000000e+00> : vector<16x128xf32>
    %24 = tpu.matmul %0, %23, %cst_17 {dimension_numbers = #tpu.dot_dimension_numbers<[1], [0], [0], [1], [0, 0, 1, 1], [], []>} : vector<16x128xf32>, vector<128x128xf32>, vector<16x128xf32> -> vector<16x128xf32>
    %c0_18 = arith.constant 0 : index
    %c0_19 = arith.constant 0 : index
    %25 = vector.load %arg9[%c0_18, %c0_19] : memref<16x128xf32, #tpu.memory_space<vmem>>, vector<16x128xf32>
    tpu.vector_store %arg9[%c0_18, %c0_19], %24 {strides = array<i32>} : memref<16x128xf32, #tpu.memory_space<vmem>>, vector<16x128xf32>,
    return
  }
  func.func @transform_0(%arg0: i32) -> (i32, i32) {
    %c0_i32 = arith.constant 0 : i32
    %c0_i32_0 = arith.constant 0 : i32
    return %arg0, %c0_i32 : i32, i32
  }
  func.func @transform_1(%arg0: i32) -> (i32, i32) {
    %c0_i32 = arith.constant 0 : i32
    %c0_i32_0 = arith.constant 0 : i32
    %c0_i32_1 = arith.constant 0 : i32
    return %c0_i32, %c0_i32_0 : i32, i32
  }
  func.func @transform_2(%arg0: i32) -> (i32, i32) {
    %c0_i32 = arith.constant 0 : i32
    %c0_i32_0 = arith.constant 0 : i32
    %c0_i32_1 = arith.constant 0 : i32
    return %c0_i32, %c0_i32_0 : i32, i32
  }
  func.func @transform_3(%arg0: i32) -> (i32, i32) {
    %c0_i32 = arith.constant 0 : i32
    %c0_i32_0 = arith.constant 0 : i32
    %c0_i32_1 = arith.constant 0 : i32
    return %c0_i32, %c0_i32_0 : i32, i32
  }
  func.func @transform_4(%arg0: i32) -> (i32, i32) {
    %c0_i32 = arith.constant 0 : i32
    %c0_i32_0 = arith.constant 0 : i32
    %c0_i32_1 = arith.constant 0 : i32
    return %c0_i32, %c0_i32_0 : i32, i32
  }
  func.func @transform_5(%arg0: i32) -> (i32, i32) {
    %c0_i32 = arith.constant 0 : i32
    %c0_i32_0 = arith.constant 0 : i32
    %c0_i32_1 = arith.constant 0 : i32
    return %c0_i32, %c0_i32_0 : i32, i32
  }
  func.func @transform_6(%arg0: i32) -> (i32, i32) {
    %c0_i32 = arith.constant 0 : i32
    %c0_i32_0 = arith.constant 0 : i32
    return %arg0, %c0_i32 : i32, i32
  }
  func.func @transform_7(%arg0: i32) -> (i32, i32) {
    %c0_i32 = arith.constant 0 : i32
    %c0_i32_0 = arith.constant 0 : i32
    return %arg0, %c0_i32 : i32, i32
  }
  func.func @transform_8(%arg0: i32) -> (i32, i32) {
    %c0_i32 = arith.constant 0 : i32
    %c0_i32_0 = arith.constant 0 : i32
    return %arg0, %c0_i32 : i32, i32
  }
}

module attributes {stable_mosaic.version = 11 : i64} {
  func.func @prep_kernel(%arg0: i32, %arg1: memref<16x128xf32, #tpu.memory_space<vmem>>, %arg2: memref<128x128xf32, #tpu.memory_space<vmem>>, %arg3: memref<1x128xf32, #tpu.memory_space<vmem>>, %arg4: memref<128x128xf32, #tpu.memory_space<vmem>>, %arg5: memref<1x128xf32, #tpu.memory_space<vmem>>, %arg6: memref<128x128xf32, #tpu.memory_space<vmem>>, %arg7: memref<16x128xf32, #tpu.memory_space<vmem>>, %arg8: memref<16x128xf32, #tpu.memory_space<vmem>>, %arg9: memref<16x128xf32, #tpu.memory_space<vmem>>) attributes {dimension_semantics = [#tpu.dimension_semantics<parallel>], iteration_bounds = array<i64: 3>, scalar_prefetch = 0 : i64, scratch_operands = 0 : i64, tpu.core_type = #tpu.core_type<tc>, window_params = [{transform_indices = @transform_0, window_bounds = array<i64: 16, 128>}, {pipeline_mode = #tpu.pipeline_mode<synchronous>, transform_indices = @transform_1, window_bounds = array<i64: 128, 128>}, {pipeline_mode = #tpu.pipeline_mode<synchronous>, transform_indices = @transform_2, window_bounds = array<i64: 1, 128>}, {pipeline_mode = #tpu.pipeline_mode<synchronous>, transform_indices = @transform_3, window_bounds = array<i64: 128, 128>}, {pipeline_mode = #tpu.pipeline_mode<synchronous>, transform_indices = @transform_4, window_bounds = array<i64: 1, 128>}, {pipeline_mode = #tpu.pipeline_mode<synchronous>, transform_indices = @transform_5, window_bounds = array<i64: 128, 128>}, {transform_indices = @transform_6, window_bounds = array<i64: 16, 128>}, {transform_indices = @transform_7, window_bounds = array<i64: 16, 128>}, {transform_indices = @transform_8, window_bounds = array<i64: 16, 128>}]} {
    %c0 = arith.constant 0 : index
    %c0_0 = arith.constant 0 : index
    %0 = vector.load %arg1[%c0, %c0_0] : memref<16x128xf32, #tpu.memory_space<vmem>>, vector<16x128xf32>
    %c0_1 = arith.constant 0 : index
    %c0_2 = arith.constant 0 : index
    %1 = vector.load %arg2[%c0_1, %c0_2] : memref<128x128xf32, #tpu.memory_space<vmem>>, vector<128x128xf32>
    %cst = arith.constant dense<0.000000e+00> : vector<16x128xf32>
    %2 = tpu.matmul %0, %1, %cst {dimension_numbers = #tpu.dot_dimension_numbers<[1], [0], [0], [1], [0, 0, 1, 1], [], []>} : vector<16x128xf32>, vector<128x128xf32>, vector<16x128xf32> -> vector<16x128xf32>
    %c0_3 = arith.constant 0 : index
    %c0_4 = arith.constant 0 : index
    %3 = vector.load %arg3[%c0_3, %c0_4] : memref<1x128xf32, #tpu.memory_space<vmem>>, vector<1x128xf32>
    %4 = vector.broadcast %3 : vector<1x128xf32> to vector<16x128xf32>
    %5 = arith.addf %2, %4 : vector<16x128xf32>
    %c0_5 = arith.constant 0 : index
    %c0_6 = arith.constant 0 : index
    %6 = vector.load %arg4[%c0_5, %c0_6] : memref<128x128xf32, #tpu.memory_space<vmem>>, vector<128x128xf32>
    %cst_7 = arith.constant dense<0.000000e+00> : vector<16x128xf32>
    %7 = tpu.matmul %0, %6, %cst_7 {dimension_numbers = #tpu.dot_dimension_numbers<[1], [0], [0], [1], [0, 0, 1, 1], [], []>} : vector<16x128xf32>, vector<128x128xf32>, vector<16x128xf32> -> vector<16x128xf32>
    %c0_8 = arith.constant 0 : index
    %c0_9 = arith.constant 0 : index
    %8 = vector.load %arg5[%c0_8, %c0_9] : memref<1x128xf32, #tpu.memory_space<vmem>>, vector<1x128xf32>
    %9 = vector.broadcast %8 : vector<1x128xf32> to vector<16x128xf32>
    %10 = arith.addf %7, %9 : vector<16x128xf32>
    %c16_i32 = arith.constant 16 : i32
    %11 = arith.muli %arg0, %c16_i32 : i32
    %12 = tpu.iota {dimensions = array<i32: 0>} : vector<16x1xi32>
    %13 = vector.broadcast %11 : i32 to vector<16x1xi32>
    %14 = arith.addi %13, %12 : vector<16x1xi32>
    %c40_i32 = arith.constant 40 : i32
    %15 = vector.broadcast %c40_i32 : i32 to vector<16x1xi32>
    %16 = arith.cmpi slt, %14, %15 : vector<16x1xi32>
    %cst_10 = arith.constant 0.000000e+00 : f32
    %17 = vector.shape_cast %16 : vector<16x1xi1> to vector<16x1xi1>
    %18 = vector.broadcast %17 : vector<16x1xi1> to vector<16x128xi1>
    %19 = vector.broadcast %cst_10 : f32 to vector<16x128xf32>
    %20 = arith.select %18, %10, %19 : vector<16x128xi1>, vector<16x128xf32>
    %c0_11 = arith.constant 0 : index
    %c0_12 = arith.constant 0 : index
    %21 = vector.load %arg7[%c0_11, %c0_12] : memref<16x128xf32, #tpu.memory_space<vmem>>, vector<16x128xf32>
    tpu.vector_store %arg7[%c0_11, %c0_12], %5 {strides = array<i32>} : memref<16x128xf32, #tpu.memory_space<vmem>>, vector<16x128xf32>,
    %c0_13 = arith.constant 0 : index
    %c0_14 = arith.constant 0 : index
    %22 = vector.load %arg8[%c0_13, %c0_14] : memref<16x128xf32, #tpu.memory_space<vmem>>, vector<16x128xf32>
    tpu.vector_store %arg8[%c0_13, %c0_14], %20 {strides = array<i32>} : memref<16x128xf32, #tpu.memory_space<vmem>>, vector<16x128xf32>,
    %c0_15 = arith.constant 0 : index
    %c0_16 = arith.constant 0 : index
    %23 = vector.load %arg6[%c0_15, %c0_16] : memref<128x128xf32, #tpu.memory_space<vmem>>, vector<128x128xf32>
    %cst_17 = arith.constant dense<0.000000e+00> : vector<16x128xf32>
    %24 = tpu.matmul %0, %23, %cst_17 {dimension_numbers = #tpu.dot_dimension_numbers<[1], [0], [0], [1], [0, 0, 1, 1], [], []>} : vector<16x128xf32>, vector<128x128xf32>, vector<16x128xf32> -> vector<16x128xf32>
    %c0_18 = arith.constant 0 : index
    %c0_19 = arith.constant 0 : index
    %25 = vector.load %arg9[%c0_18, %c0_19] : memref<16x128xf32, #tpu.memory_space<vmem>>, vector<16x128xf32>
    tpu.vector_store %arg9[%c0_18, %c0_19], %24 {strides = array<i32>} : memref<16x128xf32, #tpu.memory_space<vmem>>, vector<16x128xf32>,
    return
  }
  func.func @transform_0(%arg0: i32) -> (i32, i32) {
    %c0_i32 = arith.constant 0 : i32
    %c0_i32_0 = arith.constant 0 : i32
    return %arg0, %c0_i32 : i32, i32
  }
  func.func @transform_1(%arg0: i32) -> (i32, i32) {
    %c0_i32 = arith.constant 0 : i32
    %c0_i32_0 = arith.constant 0 : i32
    %c0_i32_1 = arith.constant 0 : i32
    return %c0_i32, %c0_i32_0 : i32, i32
  }
  func.func @transform_2(%arg0: i32) -> (i32, i32) {
    %c0_i32 = arith.constant 0 : i32
    %c0_i32_0 = arith.constant 0 : i32
    %c0_i32_1 = arith.constant 0 : i32
    return %c0_i32, %c0_i32_0 : i32, i32
  }
  func.func @transform_3(%arg0: i32) -> (i32, i32) {
    %c0_i32 = arith.constant 0 : i32
    %c0_i32_0 = arith.constant 0 : i32
    %c0_i32_1 = arith.constant 0 : i32
    return %c0_i32, %c0_i32_0 : i32, i32
  }
  func.func @transform_4(%arg0: i32) -> (i32, i32) {
    %c0_i32 = arith.constant 0 : i32
    %c0_i32_0 = arith.constant 0 : i32
    %c0_i32_1 = arith.constant 0 : i32
    return %c0_i32, %c0_i32_0 : i32, i32
  }
  func.func @transform_5(%arg0: i32) -> (i32, i32) {
    %c0_i32 = arith.constant 0 : i32
    %c0_i32_0 = arith.constant 0 : i32
    %c0_i32_1 = arith.constant 0 : i32
    return %c0_i32, %c0_i32_0 : i32, i32
  }
  func.func @transform_6(%arg0: i32) -> (i32, i32) {
    %c0_i32 = arith.constant 0 : i32
    %c0_i32_0 = arith.constant 0 : i32
    return %arg0, %c0_i32 : i32, i32
  }
  func.func @transform_7(%arg0: i32) -> (i32, i32) {
    %c0_i32 = arith.constant 0 : i32
    %c0_i32_0 = arith.constant 0 : i32
    return %arg0, %c0_i32 : i32, i32
  }
  func.func @transform_8(%arg0: i32) -> (i32, i32) {
    %c0_i32 = arith.constant 0 : i32
    %c0_i32_0 = arith.constant 0 : i32
    return %arg0, %c0_i32 : i32, i32
  }
}

</mosaic_0001>

<bundles_post_ra>
// kernel: tpu_custom_call.1
= control target key start
LH: loop header
LB: loop body
LE: loop exit
PB: predicated region body
PF: predicated region fallthrough
CT: control target
= control target key end

     0   :  { %14 = vsyncpa [#allocation3], 0  ;;  %s1986_s0 = inlined_call_operand.hbm [shape: f32[48,128], index: 0, kind: input, shape index: {}]   ;;  %s1987_s1 = inlined_call_operand.hbm [shape: f32[128,128], index: 1, kind: input, shape index: {}]   ;;  %s1988_s2 = inlined_call_operand.vmem [shape: f32[1,128], index: 2, kind: input, shape index: {}]   ;;  %s1989_s3 = inlined_call_operand.hbm [shape: f32[128,128], index: 3, kind: input, shape index: {}]   ;;  %s1990_s4 = inlined_call_operand.vmem [shape: f32[1,128], index: 4, kind: input, shape index: {}]   ;;  %s1991_s5 = inlined_call_operand.hbm [shape: f32[128,128], index: 5, kind: input, shape index: {}]   ;;  %s1992_s6 = inlined_call_operand.hbm [shape: f32[48,128], index: 6, kind: output, shape index: {0}]   ;;  %s1993_s7 = inlined_call_operand.hbm [shape: f32[48,128], index: 7, kind: output, shape index: {1}]   ;;  %s1994_s8 = inlined_call_operand.hbm [shape: f32[48,128], index: 8, kind: output, shape index: {2}]  }
   0x1   :  { %16 = vsyncpa [#allocation3 + $0x1], 0 }
   0x2   :  { %17 = vsyncpa [#allocation6], 0 }
   0x3   :  { %18 = vsyncpa [#allocation9], 0 }
   0x4   :  { %19 = vsyncpa [#allocation4], 0 }
   0x5   :  { %21 = vsyncpa [#allocation4 + $0x1], 0 }
   0x6   :  { %22 = vsyncpa [#allocation12], 0 }
   0x7   :  { %24 = vsyncpa [#allocation12 + $0x1], 0  ;;  %s1606_s27 = smov 0   ;;  %s1608_s28 = smov 0  }
   0x8   :  { %s1610_s29 = smov 0   ;;  %s1612_s30 = smov 0  }
   0x9 LB: > { %2001 = sst [smem:[#allocation19_spill]] %s1536_s27  ;;  %s1627_s9 = sadd.s32 4294967295, %s1548_s30   ;;  %s1548_s30 = sphi %s1612_s30, %s2026_s30   ;;  %s1544_s29 = sphi %s1610_s29, %s2025_s29   ;;  %s1540_s28 = sphi %s1608_s28, %s2024_s28   ;;  %s1536_s27 = sphi %s1606_s27, %s2023_s27  }
   0xa   : > { %s1996_s10 = sadd.s32 4294967294, %s1548_s30   ;;  %p50_p0 = scmp.ne.s32.totalorder %s1540_s28, %s1536_s27 }
   0xb   : > { %p1995_p1 = scmp.eq.s32.totalorder %s1627_s9, 0  ;;  %p185_p3 = scmp.eq.s32.totalorder %s1996_s10, 2 }
   0xc   : > { %p920_p5 = scmp.ge.s32.totalorder %s1548_s30, 1  ;;  %p244_p7 = scmp.lt.s32.totalorder %s1548_s30, 4 }
   0xd   : > { %p1638_p4 = por %p1995_p1, %p50_p0  ;;  %p1643_p6 = por %p185_p3, %p50_p0 }
   0xe   : > { %p1648_p8 = pnand %p920_p5, %p244_p7  ;;  %s1550_s14 = smov [#allocation5]  }
   0xf   : > { %s2002_s11 = scalar_select %p1638_p4, 1, 0 }
  0x10   : > { %s2003_s12 = scalar_select %p1643_p6, 1, 0 }
  0x11   : > { %s2005_s13 = scalar_select %p1648_p8, 1, 0 }
  0x12   : > { %2004 = sst [smem:[#allocation20_spill]] %s2003_s12  ;;  %s256_s15 = sshll.u32 %s1550_s14, 4  ;;  %s1652_s15 = int_to_ptr.vmem [resolvable:$true] %s256_s15 }
  0x13   : > { %p1229_p9 = pneg %p1648_p8  ;;  %s1551_s17 = smov [#allocation7]  }
  0x14   : > { %s272_s18 = sshll.u32 %s1551_s17, 4  ;;  %s1552_s19 = smov [#allocation8]   ;;  %s1662_s18 = int_to_ptr.vmem [resolvable:$true] %s272_s18 }
  0x15   : > { %p1658_p10 = pnand %p1229_p9, %p1995_p1  ;;  %s1664_s20 = sshll.u32 %s1552_s19, 4  ;;  %s289_s20 = int_to_ptr.vmem [resolvable:$true] %s1664_s20 }
  0x16   : > { %s1300_s23 = scalar_lea.hbm %s1987_s1, 2048 }
  0x17   : > { %p1301_p11 = scmp.ne.s32.totalorder %s1987_s1, %s1300_s23  ;;  %p1674_p12 = pneg %p1658_p10 }
  0x18   : > { %p1307_p3 = scmp.lt.u32.totalorder %s1300_s23, %s1987_s1 }
  0x19   : > { %p1303_p13 = pnand %p1674_p12, %p1301_p11 }
  0x1b   : > { %p1304_p0 = pneg %p1303_p13 }
  0x1d   : > { %p1309_p5 = pnand %p1307_p3, %p1304_p0 }
  0x1f   : > { %1312 = shalt.err (!%p1309_p5)
}
  0x20   : > { %s1313_s19 = scalar_lea.vmem %s1652_s15, 2048  ;;  %p1321_p2 = scmp.lt.s32.totalorder %s1652_s15, %s1652_s15 }
  0x21   : > { %p1314_p7 = scmp.ne.s32.totalorder %s1652_s15, %s1313_s19  ;;  %p1322_p6 = scmp.lt.s32.totalorder %s1313_s19, %s1313_s19 }
  0x23   : > { %p1316_p9 = pnand %p1314_p7, %p1674_p12  ;;  %p1323_p11 = por %p1322_p6, %p1321_p2 }
  0x25   : > { %p1317_p1 = pneg %p1316_p9 }
  0x27   : > { %p1324_p13 = pnand %p1323_p11, %p1317_p1 }
  0x29   : > { %1327 = shalt.err (!%p1324_p13)
}
  0x2a   : > { %s1553_s21 = smov 128   ;;  %s1554_s22 = smov 8  }
  0x2b   : > { %1232 = dma.hbm_to_vmem [thread:$0]  (!%p1658_p10), %s1987_s1, 2048, %s1652_s15, [#allocation6], %s1553_s21, %s1553_s21, %s1554_s22  }
  0x2c   : > { %s1328_s17 = scalar_lea.hbm %s1989_s3, 2048 }
  0x2d   : > { %p1329_p1 = scmp.ne.s32.totalorder %s1989_s3, %s1328_s17  ;;  %p1335_p0 = scmp.lt.u32.totalorder %s1328_s17, %s1989_s3 }
  0x2f   : > { %p1331_p2 = pnand %p1329_p1, %p1674_p12 }
  0x31   : > { %p1332_p6 = pneg %p1331_p2 }
  0x33   : > { %p1337_p3 = pnand %p1335_p0, %p1332_p6 }
  0x35   : > { %1340 = shalt.err (!%p1337_p3)
}
  0x36   : > { %s1341_s15 = scalar_lea.vmem %s1662_s18, 2048  ;;  %p1349_p11 = scmp.lt.s32.totalorder %s1662_s18, %s1662_s18 }
  0x37   : > { %p1342_p5 = scmp.ne.s32.totalorder %s1662_s18, %s1341_s15  ;;  %p1350_p13 = scmp.lt.s32.totalorder %s1341_s15, %s1341_s15 }
  0x39   : > { %p1344_p7 = pnand %p1342_p5, %p1674_p12  ;;  %p1351_p1 = por %p1350_p13, %p1349_p11 }
  0x3b   : > { %p1345_p9 = pneg %p1344_p7 }
  0x3d   : > { %p1352_p2 = pnand %p1351_p1, %p1345_p9 }
  0x3f   : > { %1355 = shalt.err (!%p1352_p2)
}
  0x40   : > { %1235 = dma.hbm_to_vmem [thread:$0]  (!%p1658_p10), %s1989_s3, 2048, %s1662_s18, [#allocation6], %s1553_s21, %s1553_s21, %s1554_s22  }
  0x41   : > { %s1356_s24 = scalar_lea.hbm %s1991_s5, 2048 }
  0x42   : > { %p1357_p6 = scmp.ne.s32.totalorder %s1991_s5, %s1356_s24  ;;  %p1363_p5 = scmp.lt.u32.totalorder %s1356_s24, %s1991_s5 }
  0x44   : > { %p1359_p0 = pnand %p1357_p6, %p1674_p12 }
  0x46   : > { %p1360_p3 = pneg %p1359_p0 }
  0x48   : > { %p1365_p7 = pnand %p1363_p5, %p1360_p3 }
  0x4a   : > { %1368 = shalt.err (!%p1365_p7)
}
  0x4b   : > { %s1369_s15 = scalar_lea.vmem %s289_s20, 2048  ;;  %p1377_p1 = scmp.lt.s32.totalorder %s289_s20, %s289_s20 }
  0x4c   : > { %p1370_p9 = scmp.ne.s32.totalorder %s289_s20, %s1369_s15  ;;  %p1378_p2 = scmp.lt.s32.totalorder %s1369_s15, %s1369_s15 }
  0x4e   : > { %p1372_p11 = pnand %p1370_p9, %p1674_p12  ;;  %p1379_p4 = por %p1378_p2, %p1377_p1 }
  0x50   : > { %p1373_p13 = pneg %p1372_p11 }
  0x52   : > { %p1380_p8 = pnand %p1379_p4, %p1373_p13 }
  0x54   : > { %1383 = shalt.err (!%p1380_p8)
}
  0x55   : > { %1238 = dma.hbm_to_vmem [thread:$0]  (!%p1658_p10), %s1991_s5, 2048, %s289_s20, [#allocation9], %s1553_s21, %s1553_s21, %s1554_s22  }
  0x56   : > { %s1747_s26 = sadd.s32 1, %s1548_s30   ;;  %s37_s10 = sadd.s32 1, %s1544_s29 }
  0x57   : > { %s34_s16 = ssub.s32 %s1548_s30, %s1747_s26  ;;  %p44_p8 = scmp.ne.s32.totalorder %s1544_s29, %s1540_s28 }
  0x58   : > { %p35_p4 = scmp.eq.s32.totalorder %s34_s16, 0  ;;  %p45_p12 = scmp.eq.s32.totalorder %s1548_s30, 0 }
  0x59   : > { %p1256_p6 = scmp.lt.s32.totalorder %s1548_s30, 3  ;;  %p2008_p3 = scmp.eq.s32.totalorder %s1627_s9, 2 }
  0x5a   : > { %s1757_s12 = scalar_select %p35_p4, %s1544_s29, %s37_s10  }
  0x5b   : > { %p46_p0 = por %p45_p12, %p44_p8  ;;  %p1761_p5 = por %p2008_p3, %p44_p8 }
  0x5c   : > { %s302_s24 = sand.u32 1, %s1544_s29   ;;  %s950_s25 = sshll.u32 %s1548_s30, 8 }
  0x5d   : > { %s925_s20 = sshll.u32 %s302_s24, 4  ;;  %s1770_s19 = scalar_lea.hbm %s1986_s0, %s950_s25 }
  0x5e   : > { %s306_s15 = scalar_lea.vmem [#allocation2], %s925_s20  ;;  %p1772_p10 = pnand %p1256_p6, %p46_p0 }
  0x5f   : > { %s313_s18 = sshll.u32 %s306_s15, 4  ;;  %s1778_s16 = scalar_lea.sflag [#allocation3], %s302_s24  ;;  %s1776_s18 = int_to_ptr.vmem [resolvable:$true] %s313_s18 }
  0x60   : > { %s1384_s10 = scalar_lea.hbm %s1770_s19, 256  ;;  %p1386_p9 = pneg %p1772_p10 }
  0x61   : > { %p1385_p7 = scmp.ne.s32.totalorder %s1770_s19, %s1384_s10  ;;  %s1389_s14 = scalar_lea.hbm %s1986_s0, 768 }
  0x62   : > { %p1390_p1 = scmp.lt.u32.totalorder %s1770_s19, %s1986_s0  ;;  %p1391_p2 = scmp.lt.u32.totalorder %s1389_s14, %s1384_s10 }
  0x63   : > { %p1387_p11 = pnand %p1386_p9, %p1385_p7  ;;  %p1393_p8 = scmp.lt.u32.totalorder %s1384_s10, %s1770_s19 }
  0x64   : > { %p1392_p4 = por %p1391_p2, %p1390_p1 }
  0x65   : > { %p1388_p13 = pneg %p1387_p11 }
  0x66   : > { %p1394_p12 = por %p1393_p8, %p1392_p4 }
  0x68   : > { %p1395_p6 = pnand %p1394_p12, %p1388_p13 }
  0x6a   : > { %1398 = shalt.err (!%p1395_p6)
}
  0x6b   : > { %s1399_s24 = scalar_lea.vmem %s1776_s18, 256  ;;  %s1555_s25 = smov [#allocation2]  }
  0x6c   : > { %p1400_p0 = scmp.ne.s32.totalorder %s1776_s18, %s1399_s24  ;;  %s1404_s20 = sshll.u32 %s1555_s25, 4  ;;  %s1405_s20 = int_to_ptr.vmem [resolvable:$false] %s1404_s20 }
  0x6d   : > { %s1406_s17 = scalar_lea.vmem %s1405_s20, 512  ;;  %p1407_p11 = scmp.lt.s32.totalorder %s1776_s18, %s1405_s20 }
  0x6e   : > { %p1402_p3 = pnand %p1400_p0, %p1386_p9  ;;  %p1408_p1 = scmp.lt.s32.totalorder %s1406_s17, %s1399_s24 }
  0x70   : > { %p1403_p7 = pneg %p1402_p3  ;;  %p1409_p2 = por %p1408_p1, %p1407_p11 }
  0x72   : > { %p1410_p4 = pnand %p1409_p2, %p1403_p7 }
  0x74   : > { %1413 = shalt.err (!%p1410_p4)
}
  0x75   : > { %1242 = dma.hbm_to_vmem [thread:$0]  (!%p1772_p10), %s1770_s19, 256, %s1776_s18, %s1778_s16, %s1553_s21, %s1553_s21, %s1554_s22  }
  0x76   : > { %p2011_p9 = scmp.ne.s32.totalorder %s2005_s13, 0 }
  0x77   : > { %s1812_s10 = sand.u32 (!%p2011_p9), 1, %s1540_s28   ;;  %p2012_p13 = scmp.ne.s32.totalorder (!%p2011_p9), %s2002_s11, 0 }
  0x78   : > { %325 = sbr.rel (%p2011_p9) target bundleno = 449 (0x1c1), region = 44  ;;  %s1815_s14 = sshll.u32 (!%p2011_p9), %s1812_s10, 4 }
  0x79   : > { %s328_s27 = scalar_lea.sflag (!%p2011_p9), [#allocation3], %s1812_s10  ;;  %s331_s15 = scalar_lea.vmem (!%p2011_p9), [#allocation2], %s1815_s14 }
  0x7f   : > { %1515 = dma.done.wait (%p2012_p13), %s328_s27, 256  }
  0x80   : > { %1517 = vsyncadd (%p2012_p13), %s328_s27, 4294967040  ;;  %p2013_p10 = scmp.eq.s32.totalorder %s1627_s9, 0 }
  0x82   : > { %1519 = dma.done.wait (%p2013_p10), [#allocation6], 4096   ;;  %p2014_p8 = pmov %p2013_p10 }
  0x84   : > { %1521 = vsyncadd (%p2014_p8), [#allocation6], 4294963200  ;;  %p2015_p12 = pmov %p2014_p8 }
  0x85   : > { %p2016_p6 = pmov %p2014_p8 }
  0x86   : > { %1523 = dma.done.wait (%p2015_p12), [#allocation9], 2048  }
  0x87   : > { %1525 = vsyncadd (%p2016_p6), [#allocation9], 4294965248  ;;  %v392_v0 = vld [vmem:[#allocation5] sm:$0xff]  ;;  %v393_v1 = vld [vmem:[#allocation5 + $0x8] sm:$0xff]  ;;  %s938_s11 = sshll.u32 %s1627_s9, 4  ;;  %s371_s13 = scalar_lea.vmem [#allocation10], %s1815_s14 }
  0x88   : > { %v394_v2 = vld [vmem:[#allocation5 + $0x10] sm:$0xff]  ;;  %v1113_v3 = vpack.c.bf16 %v393_v1, %v392_v0  ;;  %v395_v4 = vld [vmem:[#allocation5 + $0x18] sm:$0xff]  ;;  %v396_v6 = vld [vmem:[#allocation5 + $0x20] sm:$0xff]  ;;  %s724_s21 = sshll.u32 %s371_s13, 4  ;;  %s1846_s18 = sshll.u32 %s1627_s9, 8  ;;  %s1848_s21 = int_to_ptr.vmem [resolvable:$true] %s724_s21 }
  0x89   : > { %v1117_v5 = vpack.c.bf16 %v395_v4, %v394_v2  ;;  %v397_v7 = vld [vmem:[#allocation5 + $0x28] sm:$0xff]  ;;  %v490_v8 = vld [vmem:[#allocation7] sm:$0xff]  ;;  %v398_v10 = vld [vmem:[#allocation5 + $0x30] sm:$0xff]  ;;  %s1854_s25 = scalar_lea.hbm %s1992_s6, %s1846_s18  ;;  %s1860_s27 = scalar_lea.vmem [#allocation11], %s1815_s14 }
  0x8a   : > { %1114 = vmatprep.subr.bf16.mxu0 %v1113_v3  ;;  %v1121_v9 = vpack.c.bf16 %v397_v7, %v396_v6  ;;  %v399_v11 = vld [vmem:[#allocation5 + $0x38] sm:$0xff]  ;;  %v491_v12 = vld [vmem:[#allocation7 + $0x8] sm:$0xff]  ;;  %v1833_v14 = vld [vmem:[%s331_s15] sm:$0xff]  ;;  %s701_s22 = scalar_lea.sflag [#allocation4], %s1812_s10  ;;  %s1414_s19 = scalar_lea.vmem %s1848_s21, 256 }
  0x8b   : > { %1116 = vmatpush3.bf16.msra.mxu0 %v1113_v3  ;;  %v1145_v13 = vpack.c.bf16 %v491_v12, %v490_v8  ;;  %v492_v15 = vld [vmem:[#allocation7 + $0x10] sm:$0xff]  ;;  %v493_v16 = vld [vmem:[#allocation7 + $0x18] sm:$0xff]  ;;  %1040 = vmatprep.mubr.f32.mxu0 %v1833_v14  ;;  %v494_v18 = vld [vmem:[#allocation7 + $0x20] sm:$0xff]  ;;  %v1125_v20 = vpack.c.bf16 %v399_v11, %v398_v10  ;;  %v589_v10 = vlaneseq  ;;  %p1415_p0 = scmp.ne.s32.totalorder %s1848_s21, %s1414_s19  ;;  %s1556_s16 = smov [#allocation10]  }
  0x8c   : > { %1118 = vmatprep.subr.bf16.mxu0 %v1117_v5  ;;  %v1149_v17 = vpack.c.bf16 %v493_v16, %v492_v15  ;;  %1075 = vmatprep.mubr.f32.mxu1 %v1833_v14  ;;  %v495_v19 = vld [vmem:[#allocation7 + $0x28] sm:$0xff]  ;;  %v400_v21 = vld [vmem:[#allocation5 + $0x40] sm:$0xff]  ;;  %v496_v24 = vld [vmem:[#allocation7 + $0x30] sm:$0xff]  ;;  %s1418_s24 = sshll.u32 %s1556_s16, 4  ;;  %s1419_s24 = int_to_ptr.vmem [resolvable:$false] %s1418_s24 }
  0x8d   : > { %1146 = vmatprep.subr.bf16.mxu1 %v1145_v13  ;;  %v401_v22 = vld [vmem:[#allocation5 + $0x48] sm:$0xff]  ;;  %v1153_v23 = vpack.c.bf16 %v495_v19, %v494_v18  ;;  %v497_v25 = vld [vmem:[#allocation7 + $0x38] sm:$0xff]  ;;  %v402_v27 = vld [vmem:[#allocation5 + $0x50] sm:$0xff]  ;;  %v590_v11 = vshrl.u32 %v589_v10, 7  ;;  %p1416_p3 = pnand %p1415_p0, %p1761_p5  ;;  %s1420_s20 = scalar_lea.vmem %s1419_s24, 512 }
  0x8e   : > { %1148 = vmatpush3.bf16.msra.mxu1 %v1145_v13  ;;  %v1129_v26 = vpack.c.bf16 %v401_v22, %v400_v21  ;;  %v403_v28 = vld [vmem:[#allocation5 + $0x58] sm:$0xff]  ;;  %v1157_v29 = vpack.c.bf16 %v497_v25, %v496_v24  ;;  %v498_v30 = vld [vmem:[#allocation7 + $0x40] sm:$0xff]  ;;  %v499_v31 = vld [vmem:[#allocation7 + $0x48] sm:$0xff]  ;;  %p1421_p11 = scmp.lt.s32.totalorder %s1848_s21, %s1419_s24  ;;  %p1422_p1 = scmp.lt.s32.totalorder %s1420_s20, %s1414_s19 }
  0x8f   : > { %1120 = vmatpush3.bf16.msra.mxu0 %v1117_v5  ;;  %1150 = vmatprep.subr.bf16.mxu1 %v1149_v17  ;;  %v1133_v32 = vpack.c.bf16 %v403_v28, %v402_v27  ;;  %v404_v33 = vld [vmem:[#allocation5 + $0x60] sm:$0xff]  ;;  %v405_v34 = vld [vmem:[#allocation5 + $0x68] sm:$0xff]  ;;  %v1161_v35 = vpack.c.bf16 %v499_v31, %v498_v30  ;;  %v500_v36 = vld [vmem:[#allocation7 + $0x50] sm:$0xff]  ;;  %v591_v12 = vadd.s32 8, %v590_v11  ;;  %p1417_p7 = pneg %p1416_p3 }
  0x90   : > { %1122 = vmatprep.subr.bf16.mxu0 %v1121_v9  ;;  %v501_v37 = vld [vmem:[#allocation7 + $0x58] sm:$0xff]  ;;  %v1137_v38 = vpack.c.bf16 %v405_v34, %v404_v33  ;;  %v406_v39 = vld [vmem:[#allocation5 + $0x70] sm:$0xff]  ;;  %v502_v42 = vld [vmem:[#allocation7 + $0x60] sm:$0xff]  ;;  %p1423_p2 = por %p1422_p1, %p1421_p11 }
  0x91   : > { %v407_v40 = vld [vmem:[#allocation5 + $0x78] sm:$0xff]  ;;  %v1165_v41 = vpack.c.bf16 %v501_v37, %v500_v36  ;;  %v503_v43 = vld [vmem:[#allocation7 + $0x68] sm:$0xff]  ;;  %v607_v45 = vld [vmem:[#allocation8] sm:$0xff] }
  0x92   : > { %1152 = vmatpush3.bf16.msra.mxu1 %v1149_v17  ;;  %v1141_v44 = vpack.c.bf16 %v407_v40, %v406_v39  ;;  %v608_v46 = vld [vmem:[#allocation8 + $0x8] sm:$0xff]  ;;  %v1169_v47 = vpack.c.bf16 %v503_v43, %v502_v42  ;;  %v504_v48 = vld [vmem:[#allocation7 + $0x70] sm:$0xff]  ;;  %v505_v49 = vld [vmem:[#allocation7 + $0x78] sm:$0xff]  ;;  %p1424_p4 = pnand %p1423_p2, %p1417_p7 }
  0x93   : > { %1124 = vmatpush3.bf16.msra.mxu0 %v1121_v9  ;;  %1154 = vmatprep.subr.bf16.mxu1 %v1153_v23  ;;  %v1177_v50 = vpack.c.bf16 %v608_v46, %v607_v45  ;;  %v609_v51 = vld [vmem:[#allocation8 + $0x10] sm:$0xff]  ;;  %v610_v52 = vld [vmem:[#allocation8 + $0x18] sm:$0xff]  ;;  %v1173_v53 = vpack.c.bf16 %v505_v49, %v504_v48  ;;  %v611_v56 = vld [vmem:[#allocation8 + $0x20] sm:$0xff] }
  0x94   : > { %1126 = vmatprep.subr.bf16.mxu0 %v1125_v20  ;;  %v391_v54 = vld [vmem:[%s331_s15 + $0x8] sm:$0xff]  ;;  %v1181_v55 = vpack.c.bf16 %v610_v52, %v609_v51  ;;  %v613_v59 = vld [vmem:[#allocation8 + $0x30] sm:$0xff]  ;;  %v615_v62 = vld [vmem:[#allocation8 + $0x40] sm:$0xff] }
  0x95   : > { %v612_v57 = vld [vmem:[#allocation8 + $0x28] sm:$0xff]  ;;  %v614_v60 = vld [vmem:[#allocation8 + $0x38] sm:$0xff]  ;;  %v617_v1 = vld [vmem:[#allocation8 + $0x50] sm:$0xff] }
  0x96   : > { %1156 = vmatpush3.bf16.msra.mxu1 %v1153_v23  ;;  %v1185_v58 = vpack.c.bf16 %v612_v57, %v611_v56  ;;  %v1189_v61 = vpack.c.bf16 %v614_v60, %v613_v59  ;;  %v616_v63 = vld [vmem:[#allocation8 + $0x48] sm:$0xff]  ;;  %v618_v2 = vld [vmem:[#allocation8 + $0x58] sm:$0xff]  ;;  %v619_v4 = vld [vmem:[#allocation8 + $0x60] sm:$0xff] }
  0x97   : > { %1128 = vmatpush3.bf16.msra.mxu0 %v1125_v20  ;;  %1158 = vmatprep.subr.bf16.mxu1 %v1157_v29  ;;  %v1193_v0 = vpack.c.bf16 %v616_v63, %v615_v62  ;;  %v1197_v3 = vpack.c.bf16 %v618_v2, %v617_v1  ;;  %v620_v5 = vld [vmem:[#allocation8 + $0x68] sm:$0xff]  ;;  %v621_v7 = vld [vmem:[#allocation8 + $0x70] sm:$0xff]  ;;  %v622_v8 = vld [vmem:[#allocation8 + $0x78] sm:$0xff] }
  0x98   : > { %1130 = vmatprep.subr.bf16.mxu0 %v1129_v26  ;;  %v1201_v6 = vpack.c.bf16 %v620_v5, %v619_v4  ;;  %v1205_v9 = vpack.c.bf16 %v622_v8, %v621_v7  ;;  %v936_v13 = vld [vmem:[%s1988_s2] ss:$0 sm:$0xff] }
  0x99   : > { %v937_v21 = vld [vmem:[%s1990_s4] ss:$0 sm:$0xff] }
  0x9a   : > { %1160 = vmatpush3.bf16.msra.mxu1 %v1157_v29 }
  0x9b   : > { %1132 = vmatpush3.bf16.msra.mxu0 %v1129_v26  ;;  %1162 = vmatprep.subr.bf16.mxu1 %v1161_v35 }
  0x9c   : > { %1134 = vmatprep.subr.bf16.mxu0 %v1133_v32 }
  0x9e   : > { %1164 = vmatpush3.bf16.msra.mxu1 %v1161_v35 }
  0x9f   : > { %1136 = vmatpush3.bf16.msra.mxu0 %v1133_v32  ;;  %1166 = vmatprep.subr.bf16.mxu1 %v1165_v41 }
  0xa0   : > { %1138 = vmatprep.subr.bf16.mxu0 %v1137_v38 }
  0xa2   : > { %1168 = vmatpush3.bf16.msra.mxu1 %v1165_v41 }
  0xa3   : > { %1140 = vmatpush3.bf16.msra.mxu0 %v1137_v38  ;;  %1170 = vmatprep.subr.bf16.mxu1 %v1169_v47 }
  0xa4   : > { %1142 = vmatprep.subr.bf16.mxu0 %v1141_v44 }
  0xa6   : > { %1172 = vmatpush3.bf16.msra.mxu1 %v1169_v47 }
  0xa7   : > { %1144 = vmatpush3.bf16.msra.mxu0 %v1141_v44  ;;  %1174 = vmatprep.subr.bf16.mxu1 %v1173_v53 }
  0xa8   : > { %1178 = vmatprep.subr.bf16.mxu0 %v1177_v50 }
  0xaa   : > { %1041 = vmatmul.mubr.f32.vlgmr.msra.gmra.mrb[0].mxu0 %v391_v54  ;;  %1176 = vmatpush3.bf16.msra.mxu1 %v1173_v53 }
  0xab   : > { %1180 = vmatpush3.bf16.msra.mxu0 %v1177_v50  ;;  %1110 = vmatprep.mubr.f32.mxu0 %v1833_v14  ;;  %v592_v14 = vstv %s938_s11 }
  0xac   : > { %1182 = vmatprep.subr.bf16.mxu0 %v1181_v55  ;;  %v594_v18 = vadd.s32 %v592_v14, %v591_v12  ;;  %v593_v20 = vadd.s32 %v592_v14, %v590_v11 }
  0xad   : > { %1076 = vmatmul.mubr.f32.vlgmr.msra.gmra.mrb[0].mxu1 %v391_v54 }
  0xae   : > { %vm596_vm0 = vcmp.lt.s32.totalorder %v594_v18, 40 }
  0xaf   : > { %1184 = vmatpush3.bf16.msra.mxu0 %v1181_v55 }
  0xb0   : > { %1186 = vmatprep.subr.bf16.mxu0 %v1185_v58 }
  0xb3   : > { %1188 = vmatpush3.bf16.msra.mxu0 %v1185_v58 }
  0xb4   : > { %1190 = vmatprep.subr.bf16.mxu0 %v1189_v61 }
  0xb7   : > { %1192 = vmatpush3.bf16.msra.mxu0 %v1189_v61 }
  0xb8   : > { %1194 = vmatprep.subr.bf16.mxu0 %v1193_v0 }
  0xbb   : > { %1196 = vmatpush3.bf16.msra.mxu0 %v1193_v0 }
  0xbc   : > { %1198 = vmatprep.subr.bf16.mxu0 %v1197_v3 }
  0xbf   : > { %1200 = vmatpush3.bf16.msra.mxu0 %v1197_v3 }
  0xc0   : > { %1202 = vmatprep.subr.bf16.mxu0 %v1201_v6 }
  0xc3   : > { %1204 = vmatpush3.bf16.msra.mxu0 %v1201_v6 }
  0xc4   : > { %1206 = vmatprep.subr.bf16.mxu0 %v1205_v9 }
  0xc7   : > { %1208 = vmatpush3.bf16.msra.mxu0 %v1205_v9 }
  0xca   : > { %1111 = vmatmul.mubr.f32.vlgmr.msra.gmra.mrb[2].mxu0 %v391_v54 }
 0x17d   : > { %v1042_v15 = vpop.f32.mrb[0].mxu0 }
 0x17e   : > { %v487_v16 = vadd.f32 %v1042_v15, %v936_v13  ;;  %v481_v17 = vpop.f32.mrb[1].mxu0 }
 0x17f   : > { %v482_v19 = vadd.f32 %v936_v13, %v481_v17 }
 0x180   : > { %604 = vst [vmem:[%s371_s13 + $0x8] sm:$0xff] %v487_v16  ;;  %v1077_v22 = vpop.f32.mrb[0].mxu1 }
 0x181   : > { %603 = vst [vmem:[%s371_s13] sm:$0xff] %v482_v19 }
 0x182   : > { %1427 = shalt.err (!%p1424_p4)
}
 0x183   : > { %s1428_s13 = scalar_lea.hbm %s1854_s25, 256  ;;  %s1432_s16 = scalar_lea.hbm %s1992_s6, 768 }
 0x184   : > { %p1429_p9 = scmp.ne.s32.totalorder %s1854_s25, %s1428_s13  ;;  %p1433_p8 = scmp.lt.u32.totalorder %s1854_s25, %s1992_s6 }
 0x185   : > { %p1434_p12 = scmp.lt.u32.totalorder %s1432_s16, %s1428_s13  ;;  %p1436_p0 = scmp.lt.u32.totalorder %s1428_s13, %s1854_s25 }
 0x186   : > { %p1430_p13 = pnand %p1429_p9, %p1761_p5 }
 0x187   : > { %p1435_p6 = por %p1434_p12, %p1433_p8 }
 0x188   : > { %p1431_p10 = pneg %p1430_p13 }
 0x189   : > { %p1437_p3 = por %p1436_p0, %p1435_p6 }
 0x18b   : > { %p1438_p7 = pnand %p1437_p3, %p1431_p10 }
 0x18d   : > { %1441 = shalt.err (!%p1438_p7)
}
 0x18e   : > { %s1557_s19 = smov 128   ;;  %s1558_s11 = smov 8   ;;  %v585_v23 = vadd.f32 %v1077_v22, %v937_v21  ;;  %v579_v24 = vpop.f32.mrb[1].mxu1  ;;  %vm595_vm1 = vcmp.lt.s32.totalorder %v593_v20, 40 }
 0x18f   : > { %1223 = dma.vmem_to_hbm [thread:$0]  (%p1761_p5), %s1848_s21, 256, %s1854_s25, %s701_s22, %s1557_s19, %s1557_s19, %s1558_s11   ;;  %v580_v25 = vadd.f32 %v937_v21, %v579_v24 }
 0x190   : > { %s2017_s15 = sshll.u32 %s1860_s27, 4  ;;  %v602_v26 = vsel %vm596_vm0, %v585_v23, 0.0  ;;  %s1900_s17 = scalar_lea.hbm %s1993_s7, %s1846_s18  ;;  %s1893_s15 = int_to_ptr.vmem [resolvable:$true] %s2017_s15 }
 0x191   : > { %606 = vst [vmem:[%s1860_s27 + $0x8] sm:$0xff] %v602_v26  ;;  %v601_v27 = vsel %vm595_vm1, %v580_v25, 0.0  ;;  %s2018_s10 = sand.u32 1, %s1627_s9   ;;  %s1442_s25 = scalar_lea.vmem %s1893_s15, 256 }
 0x192   : > { %605 = vst [vmem:[%s1860_s27] sm:$0xff] %v601_v27  ;;  %s1906_s21 = scalar_lea.sflag [#allocation12], %s2018_s10  ;;  %p1443_p11 = scmp.ne.s32.totalorder %s1893_s15, %s1442_s25 }
 0x193   : > { %s1559_s22 = smov [#allocation11]  }
 0x194   : > { %p1444_p1 = pnand %p1443_p11, %p1761_p5  ;;  %s1446_s16 = sshll.u32 %s1559_s22, 4  ;;  %s1447_s16 = int_to_ptr.vmem [resolvable:$false] %s1446_s16 }
 0x195   : > { %s1448_s24 = scalar_lea.vmem %s1447_s16, 512  ;;  %p1449_p4 = scmp.lt.s32.totalorder %s1893_s15, %s1447_s16 }
 0x196   : > { %p1445_p2 = pneg %p1444_p1  ;;  %p1450_p9 = scmp.lt.s32.totalorder %s1448_s24, %s1442_s25 }
 0x198   : > { %p1451_p13 = por %p1450_p9, %p1449_p4 }
 0x19a   : > { %p1452_p10 = pnand %p1451_p13, %p1445_p2 }
 0x19c   : > { %1455 = shalt.err (!%p1452_p10)
}
 0x19d   : > { %s1456_s9 = scalar_lea.hbm %s1900_s17, 256  ;;  %s1460_s13 = scalar_lea.hbm %s1993_s7, 768 }
 0x19e   : > { %p1457_p8 = scmp.ne.s32.totalorder %s1900_s17, %s1456_s9  ;;  %p1461_p0 = scmp.lt.u32.totalorder %s1900_s17, %s1993_s7 }
 0x19f   : > { %p1462_p3 = scmp.lt.u32.totalorder %s1460_s13, %s1456_s9  ;;  %p1464_p11 = scmp.lt.u32.totalorder %s1456_s9, %s1900_s17 }
 0x1a0   : > { %p1458_p12 = pnand %p1457_p8, %p1761_p5 }
 0x1a1   : > { %p1463_p7 = por %p1462_p3, %p1461_p0 }
 0x1a2   : > { %p1459_p6 = pneg %p1458_p12 }
 0x1a3   : > { %p1465_p1 = por %p1464_p11, %p1463_p7 }
 0x1a5   : > { %p1466_p2 = pnand %p1465_p1, %p1459_p6 }
 0x1a7   : > { %1469 = shalt.err (!%p1466_p2)
}
 0x1a8   : > { %1224 = dma.vmem_to_hbm [thread:$0]  (%p1761_p5), %s1893_s15, 256, %s1900_s17, %s1906_s21, %s1557_s19, %s1557_s19, %s1558_s11   ;;  %v1112_v28 = vpop.f32.mrb[2].mxu0 }
 0x1a9   : > { %s385_s25 = scalar_lea.vmem [#allocation13], %s1815_s14  ;;  %s1940_s27 = scalar_lea.hbm %s1994_s8, %s1846_s18  ;;  %v689_v29 = vpop.f32.mrb[3].mxu0 }
 0x1aa   : > { %s756_s16 = sshll.u32 %s385_s25, 4  ;;  %699 = vst [vmem:[%s385_s25 + $0x8] sm:$0xff] %v1112_v28  ;;  %698 = vst [vmem:[%s385_s25] sm:$0xff] %v689_v29  ;;  %s1560_s14 = smov [#allocation13]   ;;  %s1934_s16 = int_to_ptr.vmem [resolvable:$true] %s756_s16 }
 0x1ab   : > { %s1470_s20 = scalar_lea.vmem %s1934_s16, 256  ;;  %s1474_s15 = sshll.u32 %s1560_s14, 4  ;;  %s1475_s15 = int_to_ptr.vmem [resolvable:$false] %s1474_s15 }
 0x1ac   : > { %p1471_p4 = scmp.ne.s32.totalorder %s1934_s16, %s1470_s20  ;;  %s1476_s17 = scalar_lea.vmem %s1475_s15, 512 }
 0x1ad   : > { %p1477_p10 = scmp.lt.s32.totalorder %s1934_s16, %s1475_s15  ;;  %p1478_p8 = scmp.lt.s32.totalorder %s1476_s17, %s1470_s20 }
 0x1ae   : > { %p1472_p9 = pnand %p1471_p4, %p1761_p5 }
 0x1af   : > { %p1479_p12 = por %p1478_p8, %p1477_p10 }
 0x1b0   : > { %p1473_p13 = pneg %p1472_p9 }
 0x1b2   : > { %p1480_p6 = pnand %p1479_p12, %p1473_p13 }
 0x1b4   : > { %1483 = shalt.err (!%p1480_p6)
}
 0x1b5   : > { %s1484_s18 = scalar_lea.hbm %s1940_s27, 256  ;;  %s1488_s22 = scalar_lea.hbm %s1994_s8, 768 }
 0x1b6   : > { %p1485_p0 = scmp.ne.s32.totalorder %s1940_s27, %s1484_s18  ;;  %p1489_p11 = scmp.lt.u32.totalorder %s1940_s27, %s1994_s8 }
 0x1b7   : > { %p1490_p1 = scmp.lt.u32.totalorder %s1488_s22, %s1484_s18  ;;  %p1492_p4 = scmp.lt.u32.totalorder %s1484_s18, %s1940_s27 }
 0x1b8   : > { %p1486_p3 = pnand %p1485_p0, %p1761_p5 }
 0x1b9   : > { %p1491_p2 = por %p1490_p1, %p1489_p11 }
 0x1ba   : > { %p1487_p7 = pneg %p1486_p3 }
 0x1bb   : > { %p1493_p9 = por %p1492_p4, %p1491_p2 }
 0x1bd   : > { %p1494_p13 = pnand %p1493_p9, %p1487_p7 }
 0x1bf   : > { %1497 = shalt.err (!%p1494_p13)
}
 0x1c0   : > { %1225 = dma.vmem_to_hbm [thread:$0]  (%p1761_p5), %s1934_s16, 256, %s1940_s27, %s1906_s21, %s1557_s19, %s1557_s19, %s1558_s11  }
 0x1c1 PF: > { %s2019_s9 = sld [smem:[#allocation19_spill]]  ;;  %s2020_s20 = sld [smem:[#allocation20_spill]] }
 0x1c2   : > { %p1260_p10 = scmp.ge.s32.totalorder %s1548_s30, 2 }
 0x1c7   : > { %s771_s14 = sand.u32 1, %s2019_s9   ;;  %p2021_p8 = scmp.ne.s32.totalorder %s2020_s20, 0 }
 0x1c8   : > { %s772_s15 = scalar_lea.sflag [#allocation4], %s771_s14 }
 0x1c9   : > { %p1244_p12 = pnand %p1260_p10, %p2021_p8 }
 0x1cb   : > { %1527 = dma.done.wait (!%p1244_p12), %s772_s15, 256  }
 0x1cc   : > { %1529 = vsyncadd (!%p1244_p12), %s772_s15, 4294967040  ;;  %s2022_s23 = sadd.s32 4294967294, %s1548_s30  }
 0x1cd   : > { %s780_s17 = sand.u32 1, %s2022_s23  }
 0x1ce   : > { %s781_s18 = scalar_lea.sflag [#allocation12], %s780_s17 }
 0x1cf   : > { %1531 = dma.done.wait (!%p1244_p12), %s781_s18, 512  }
 0x1d0   : > { %1533 = vsyncadd (!%p1244_p12), %s781_s18, 4294966784  ;;  %p27_p5 = scmp.ge.s32.totalorder %s1747_s26, 5   ;;  %s2023_s27 = smov %s1540_s28 }
 0x1d1   : > { %s2024_s28 = smov %s1544_s29  ;;  %s2025_s29 = smov %s1757_s12 }
 0x1d2   : > { %s2026_s30 = smov %s1747_s26  ;;  %29 = sbr.rel (!%p27_p5) target bundleno = 9 (0x9), region = 133 }
 0x1d9   :  { %795 = vsyncpa [#allocation3], 1 }
 0x1da   :  { %797 = vsyncpa [#allocation3 + $0x1], 1 }
 0x1db   :  { %798 = vsyncpa [#allocation6], 1 }
 0x1dc   :  { %799 = vsyncpa [#allocation9], 1 }
 0x1dd   :  { %800 = vsyncpa [#allocation4], 1 }
 0x1de   :  { %802 = vsyncpa [#allocation4 + $0x1], 1 }
 0x1df   :  { %803 = vsyncpa [#allocation12], 1 }
 0x1e0   :  { %805 = vsyncpa [#allocation12 + $0x1], 1 }

// kernel: tpu_custom_call.1
= control target key start
LH: loop header
LB: loop body
LE: loop exit
PB: predicated region body
PF: predicated region fallthrough
CT: control target
= control target key end

     0   :  { %14 = vsyncpa [#allocation3], 0  ;;  %s1986_s0 = inlined_call_operand.hbm [shape: f32[48,128], index: 0, kind: input, shape index: {}]   ;;  %s1987_s1 = inlined_call_operand.hbm [shape: f32[128,128], index: 1, kind: input, shape index: {}]   ;;  %s1988_s2 = inlined_call_operand.vmem [shape: f32[1,128], index: 2, kind: input, shape index: {}]   ;;  %s1989_s3 = inlined_call_operand.hbm [shape: f32[128,128], index: 3, kind: input, shape index: {}]   ;;  %s1990_s4 = inlined_call_operand.vmem [shape: f32[1,128], index: 4, kind: input, shape index: {}]   ;;  %s1991_s5 = inlined_call_operand.hbm [shape: f32[128,128], index: 5, kind: input, shape index: {}]   ;;  %s1992_s6 = inlined_call_operand.hbm [shape: f32[48,128], index: 6, kind: output, shape index: {0}]   ;;  %s1993_s7 = inlined_call_operand.hbm [shape: f32[48,128], index: 7, kind: output, shape index: {1}]   ;;  %s1994_s8 = inlined_call_operand.hbm [shape: f32[48,128], index: 8, kind: output, shape index: {2}]  }
   0x1   :  { %16 = vsyncpa [#allocation3 + $0x1], 0 }
   0x2   :  { %17 = vsyncpa [#allocation6], 0 }
   0x3   :  { %18 = vsyncpa [#allocation9], 0 }
   0x4   :  { %19 = vsyncpa [#allocation4], 0 }
   0x5   :  { %21 = vsyncpa [#allocation4 + $0x1], 0 }
   0x6   :  { %22 = vsyncpa [#allocation12], 0 }
   0x7   :  { %24 = vsyncpa [#allocation12 + $0x1], 0  ;;  %s1606_s27 = smov 0   ;;  %s1608_s28 = smov 0  }
   0x8   :  { %s1610_s29 = smov 0   ;;  %s1612_s30 = smov 0  }
   0x9 LB: > { %2001 = sst [smem:[#allocation19_spill]] %s1536_s27  ;;  %s1627_s9 = sadd.s32 4294967295, %s1548_s30   ;;  %s1548_s30 = sphi %s1612_s30, %s2026_s30   ;;  %s1544_s29 = sphi %s1610_s29, %s2025_s29   ;;  %s1540_s28 = sphi %s1608_s28, %s2024_s28   ;;  %s1536_s27 = sphi %s1606_s27, %s2023_s27  }
   0xa   : > { %s1996_s10 = sadd.s32 4294967294, %s1548_s30   ;;  %p50_p0 = scmp.ne.s32.totalorder %s1540_s28, %s1536_s27 }
   0xb   : > { %p1995_p1 = scmp.eq.s32.totalorder %s1627_s9, 0  ;;  %p185_p3 = scmp.eq.s32.totalorder %s1996_s10, 2 }
   0xc   : > { %p920_p5 = scmp.ge.s32.totalorder %s1548_s30, 1  ;;  %p244_p7 = scmp.lt.s32.totalorder %s1548_s30, 4 }
   0xd   : > { %p1638_p4 = por %p1995_p1, %p50_p0  ;;  %p1643_p6 = por %p185_p3, %p50_p0 }
   0xe   : > { %p1648_p8 = pnand %p920_p5, %p244_p7  ;;  %s1550_s14 = smov [#allocation5]  }
   0xf   : > { %s2002_s11 = scalar_select %p1638_p4, 1, 0 }
  0x10   : > { %s2003_s12 = scalar_select %p1643_p6, 1, 0 }
  0x11   : > { %s2005_s13 = scalar_select %p1648_p8, 1, 0 }
  0x12   : > { %2004 = sst [smem:[#allocation20_spill]] %s2003_s12  ;;  %s256_s15 = sshll.u32 %s1550_s14, 4  ;;  %s1652_s15 = int_to_ptr.vmem [resolvable:$true] %s256_s15 }
  0x13   : > { %p1229_p9 = pneg %p1648_p8  ;;  %s1551_s17 = smov [#allocation7]  }
  0x14   : > { %s272_s18 = sshll.u32 %s1551_s17, 4  ;;  %s1552_s19 = smov [#allocation8]   ;;  %s1662_s18 = int_to_ptr.vmem [resolvable:$true] %s272_s18 }
  0x15   : > { %p1658_p10 = pnand %p1229_p9, %p1995_p1  ;;  %s1664_s20 = sshll.u32 %s1552_s19, 4  ;;  %s289_s20 = int_to_ptr.vmem [resolvable:$true] %s1664_s20 }
  0x16   : > { %s1300_s23 = scalar_lea.hbm %s1987_s1, 2048 }
  0x17   : > { %p1301_p11 = scmp.ne.s32.totalorder %s1987_s1, %s1300_s23  ;;  %p1674_p12 = pneg %p1658_p10 }
  0x18   : > { %p1307_p3 = scmp.lt.u32.totalorder %s1300_s23, %s1987_s1 }
  0x19   : > { %p1303_p13 = pnand %p1674_p12, %p1301_p11 }
  0x1b   : > { %p1304_p0 = pneg %p1303_p13 }
  0x1d   : > { %p1309_p5 = pnand %p1307_p3, %p1304_p0 }
  0x1f   : > { %1312 = shalt.err (!%p1309_p5)
}
  0x20   : > { %s1313_s19 = scalar_lea.vmem %s1652_s15, 2048  ;;  %p1321_p2 = scmp.lt.s32.totalorder %s1652_s15, %s1652_s15 }
  0x21   : > { %p1314_p7 = scmp.ne.s32.totalorder %s1652_s15, %s1313_s19  ;;  %p1322_p6 = scmp.lt.s32.totalorder %s1313_s19, %s1313_s19 }
  0x23   : > { %p1316_p9 = pnand %p1314_p7, %p1674_p12  ;;  %p1323_p11 = por %p1322_p6, %p1321_p2 }
  0x25   : > { %p1317_p1 = pneg %p1316_p9 }
  0x27   : > { %p1324_p13 = pnand %p1323_p11, %p1317_p1 }
  0x29   : > { %1327 = shalt.err (!%p1324_p13)
}
  0x2a   : > { %s1553_s21 = smov 128   ;;  %s1554_s22 = smov 8  }
  0x2b   : > { %1232 = dma.hbm_to_vmem [thread:$0]  (!%p1658_p10), %s1987_s1, 2048, %s1652_s15, [#allocation6], %s1553_s21, %s1553_s21, %s1554_s22  }
  0x2c   : > { %s1328_s17 = scalar_lea.hbm %s1989_s3, 2048 }
  0x2d   : > { %p1329_p1 = scmp.ne.s32.totalorder %s1989_s3, %s1328_s17  ;;  %p1335_p0 = scmp.lt.u32.totalorder %s1328_s17, %s1989_s3 }
  0x2f   : > { %p1331_p2 = pnand %p1329_p1, %p1674_p12 }
  0x31   : > { %p1332_p6 = pneg %p1331_p2 }
  0x33   : > { %p1337_p3 = pnand %p1335_p0, %p1332_p6 }
  0x35   : > { %1340 = shalt.err (!%p1337_p3)
}
  0x36   : > { %s1341_s15 = scalar_lea.vmem %s1662_s18, 2048  ;;  %p1349_p11 = scmp.lt.s32.totalorder %s1662_s18, %s1662_s18 }
  0x37   : > { %p1342_p5 = scmp.ne.s32.totalorder %s1662_s18, %s1341_s15  ;;  %p1350_p13 = scmp.lt.s32.totalorder %s1341_s15, %s1341_s15 }
  0x39   : > { %p1344_p7 = pnand %p1342_p5, %p1674_p12  ;;  %p1351_p1 = por %p1350_p13, %p1349_p11 }
  0x3b   : > { %p1345_p9 = pneg %p1344_p7 }
  0x3d   : > { %p1352_p2 = pnand %p1351_p1, %p1345_p9 }
  0x3f   : > { %1355 = shalt.err (!%p1352_p2)
}
  0x40   : > { %1235 = dma.hbm_to_vmem [thread:$0]  (!%p1658_p10), %s1989_s3, 2048, %s1662_s18, [#allocation6], %s1553_s21, %s1553_s21, %s1554_s22  }
  0x41   : > { %s1356_s24 = scalar_lea.hbm %s1991_s5, 2048 }
  0x42   : > { %p1357_p6 = scmp.ne.s32.totalorder %s1991_s5, %s1356_s24  ;;  %p1363_p5 = scmp.lt.u32.totalorder %s1356_s24, %s1991_s5 }
  0x44   : > { %p1359_p0 = pnand %p1357_p6, %p1674_p12 }
  0x46   : > { %p1360_p3 = pneg %p1359_p0 }
  0x48   : > { %p1365_p7 = pnand %p1363_p5, %p1360_p3 }
  0x4a   : > { %1368 = shalt.err (!%p1365_p7)
}
  0x4b   : > { %s1369_s15 = scalar_lea.vmem %s289_s20, 2048  ;;  %p1377_p1 = scmp.lt.s32.totalorder %s289_s20, %s289_s20 }
  0x4c   : > { %p1370_p9 = scmp.ne.s32.totalorder %s289_s20, %s1369_s15  ;;  %p1378_p2 = scmp.lt.s32.totalorder %s1369_s15, %s1369_s15 }
  0x4e   : > { %p1372_p11 = pnand %p1370_p9, %p1674_p12  ;;  %p1379_p4 = por %p1378_p2, %p1377_p1 }
  0x50   : > { %p1373_p13 = pneg %p1372_p11 }
  0x52   : > { %p1380_p8 = pnand %p1379_p4, %p1373_p13 }
  0x54   : > { %1383 = shalt.err (!%p1380_p8)
}
  0x55   : > { %1238 = dma.hbm_to_vmem [thread:$0]  (!%p1658_p10), %s1991_s5, 2048, %s289_s20, [#allocation9], %s1553_s21, %s1553_s21, %s1554_s22  }
  0x56   : > { %s1747_s26 = sadd.s32 1, %s1548_s30   ;;  %s37_s10 = sadd.s32 1, %s1544_s29 }
  0x57   : > { %s34_s16 = ssub.s32 %s1548_s30, %s1747_s26  ;;  %p44_p8 = scmp.ne.s32.totalorder %s1544_s29, %s1540_s28 }
  0x58   : > { %p35_p4 = scmp.eq.s32.totalorder %s34_s16, 0  ;;  %p45_p12 = scmp.eq.s32.totalorder %s1548_s30, 0 }
  0x59   : > { %p1256_p6 = scmp.lt.s32.totalorder %s1548_s30, 3  ;;  %p2008_p3 = scmp.eq.s32.totalorder %s1627_s9, 2 }
  0x5a   : > { %s1757_s12 = scalar_select %p35_p4, %s1544_s29, %s37_s10  }
  0x5b   : > { %p46_p0 = por %p45_p12, %p44_p8  ;;  %p1761_p5 = por %p2008_p3, %p44_p8 }
  0x5c   : > { %s302_s24 = sand.u32 1, %s1544_s29   ;;  %s950_s25 = sshll.u32 %s1548_s30, 8 }
  0x5d   : > { %s925_s20 = sshll.u32 %s302_s24, 4  ;;  %s1770_s19 = scalar_lea.hbm %s1986_s0, %s950_s25 }
  0x5e   : > { %s306_s15 = scalar_lea.vmem [#allocation2], %s925_s20  ;;  %p1772_p10 = pnand %p1256_p6, %p46_p0 }
  0x5f   : > { %s313_s18 = sshll.u32 %s306_s15, 4  ;;  %s1778_s16 = scalar_lea.sflag [#allocation3], %s302_s24  ;;  %s1776_s18 = int_to_ptr.vmem [resolvable:$true] %s313_s18 }
  0x60   : > { %s1384_s10 = scalar_lea.hbm %s1770_s19, 256  ;;  %p1386_p9 = pneg %p1772_p10 }
  0x61   : > { %p1385_p7 = scmp.ne.s32.totalorder %s1770_s19, %s1384_s10  ;;  %s1389_s14 = scalar_lea.hbm %s1986_s0, 768 }
  0x62   : > { %p1390_p1 = scmp.lt.u32.totalorder %s1770_s19, %s1986_s0  ;;  %p1391_p2 = scmp.lt.u32.totalorder %s1389_s14, %s1384_s10 }
  0x63   : > { %p1387_p11 = pnand %p1386_p9, %p1385_p7  ;;  %p1393_p8 = scmp.lt.u32.totalorder %s1384_s10, %s1770_s19 }
  0x64   : > { %p1392_p4 = por %p1391_p2, %p1390_p1 }
  0x65   : > { %p1388_p13 = pneg %p1387_p11 }
  0x66   : > { %p1394_p12 = por %p1393_p8, %p1392_p4 }
  0x68   : > { %p1395_p6 = pnand %p1394_p12, %p1388_p13 }
  0x6a   : > { %1398 = shalt.err (!%p1395_p6)
}
  0x6b   : > { %s1399_s24 = scalar_lea.vmem %s1776_s18, 256  ;;  %s1555_s25 = smov [#allocation2]  }
  0x6c   : > { %p1400_p0 = scmp.ne.s32.totalorder %s1776_s18, %s1399_s24  ;;  %s1404_s20 = sshll.u32 %s1555_s25, 4  ;;  %s1405_s20 = int_to_ptr.vmem [resolvable:$false] %s1404_s20 }
  0x6d   : > { %s1406_s17 = scalar_lea.vmem %s1405_s20, 512  ;;  %p1407_p11 = scmp.lt.s32.totalorder %s1776_s18, %s1405_s20 }
  0x6e   : > { %p1402_p3 = pnand %p1400_p0, %p1386_p9  ;;  %p1408_p1 = scmp.lt.s32.totalorder %s1406_s17, %s1399_s24 }
  0x70   : > { %p1403_p7 = pneg %p1402_p3  ;;  %p1409_p2 = por %p1408_p1, %p1407_p11 }
  0x72   : > { %p1410_p4 = pnand %p1409_p2, %p1403_p7 }
  0x74   : > { %1413 = shalt.err (!%p1410_p4)
}
  0x75   : > { %1242 = dma.hbm_to_vmem [thread:$0]  (!%p1772_p10), %s1770_s19, 256, %s1776_s18, %s1778_s16, %s1553_s21, %s1553_s21, %s1554_s22  }
  0x76   : > { %p2011_p9 = scmp.ne.s32.totalorder %s2005_s13, 0 }
  0x77   : > { %s1812_s10 = sand.u32 (!%p2011_p9), 1, %s1540_s28   ;;  %p2012_p13 = scmp.ne.s32.totalorder (!%p2011_p9), %s2002_s11, 0 }
  0x78   : > { %325 = sbr.rel (%p2011_p9) target bundleno = 449 (0x1c1), region = 44  ;;  %s1815_s14 = sshll.u32 (!%p2011_p9), %s1812_s10, 4 }
  0x79   : > { %s328_s27 = scalar_lea.sflag (!%p2011_p9), [#allocation3], %s1812_s10  ;;  %s331_s15 = scalar_lea.vmem (!%p2011_p9), [#allocation2], %s1815_s14 }
  0x7f   : > { %1515 = dma.done.wait (%p2012_p13), %s328_s27, 256  }
  0x80   : > { %1517 = vsyncadd (%p2012_p13), %s328_s27, 4294967040  ;;  %p2013_p10 = scmp.eq.s32.totalorder %s1627_s9, 0 }
  0x82   : > { %1519 = dma.done.wait (%p2013_p10), [#allocation6], 4096   ;;  %p2014_p8 = pmov %p2013_p10 }
  0x84   : > { %1521 = vsyncadd (%p2014_p8), [#allocation6], 4294963200  ;;  %p2015_p12 = pmov %p2014_p8 }
  0x85   : > { %p2016_p6 = pmov %p2014_p8 }
  0x86   : > { %1523 = dma.done.wait (%p2015_p12), [#allocation9], 2048  }
  0x87   : > { %1525 = vsyncadd (%p2016_p6), [#allocation9], 4294965248  ;;  %v392_v0 = vld [vmem:[#allocation5] sm:$0xff]  ;;  %v393_v1 = vld [vmem:[#allocation5 + $0x8] sm:$0xff]  ;;  %s938_s11 = sshll.u32 %s1627_s9, 4  ;;  %s371_s13 = scalar_lea.vmem [#allocation10], %s1815_s14 }
  0x88   : > { %v394_v2 = vld [vmem:[#allocation5 + $0x10] sm:$0xff]  ;;  %v1113_v3 = vpack.c.bf16 %v393_v1, %v392_v0  ;;  %v395_v4 = vld [vmem:[#allocation5 + $0x18] sm:$0xff]  ;;  %v396_v6 = vld [vmem:[#allocation5 + $0x20] sm:$0xff]  ;;  %s724_s21 = sshll.u32 %s371_s13, 4  ;;  %s1846_s18 = sshll.u32 %s1627_s9, 8  ;;  %s1848_s21 = int_to_ptr.vmem [resolvable:$true] %s724_s21 }
  0x89   : > { %v1117_v5 = vpack.c.bf16 %v395_v4, %v394_v2  ;;  %v397_v7 = vld [vmem:[#allocation5 + $0x28] sm:$0xff]  ;;  %v490_v8 = vld [vmem:[#allocation7] sm:$0xff]  ;;  %v398_v10 = vld [vmem:[#allocation5 + $0x30] sm:$0xff]  ;;  %s1854_s25 = scalar_lea.hbm %s1992_s6, %s1846_s18  ;;  %s1860_s27 = scalar_lea.vmem [#allocation11], %s1815_s14 }
  0x8a   : > { %1114 = vmatprep.subr.bf16.mxu0 %v1113_v3  ;;  %v1121_v9 = vpack.c.bf16 %v397_v7, %v396_v6  ;;  %v399_v11 = vld [vmem:[#allocation5 + $0x38] sm:$0xff]  ;;  %v491_v12 = vld [vmem:[#allocation7 + $0x8] sm:$0xff]  ;;  %v1833_v14 = vld [vmem:[%s331_s15] sm:$0xff]  ;;  %s701_s22 = scalar_lea.sflag [#allocation4], %s1812_s10  ;;  %s1414_s19 = scalar_lea.vmem %s1848_s21, 256 }
  0x8b   : > { %1116 = vmatpush3.bf16.msra.mxu0 %v1113_v3  ;;  %v1145_v13 = vpack.c.bf16 %v491_v12, %v490_v8  ;;  %v492_v15 = vld [vmem:[#allocation7 + $0x10] sm:$0xff]  ;;  %v493_v16 = vld [vmem:[#allocation7 + $0x18] sm:$0xff]  ;;  %1040 = vmatprep.mubr.f32.mxu0 %v1833_v14  ;;  %v494_v18 = vld [vmem:[#allocation7 + $0x20] sm:$0xff]  ;;  %v1125_v20 = vpack.c.bf16 %v399_v11, %v398_v10  ;;  %v589_v10 = vlaneseq  ;;  %p1415_p0 = scmp.ne.s32.totalorder %s1848_s21, %s1414_s19  ;;  %s1556_s16 = smov [#allocation10]  }
  0x8c   : > { %1118 = vmatprep.subr.bf16.mxu0 %v1117_v5  ;;  %v1149_v17 = vpack.c.bf16 %v493_v16, %v492_v15  ;;  %1075 = vmatprep.mubr.f32.mxu1 %v1833_v14  ;;  %v495_v19 = vld [vmem:[#allocation7 + $0x28] sm:$0xff]  ;;  %v400_v21 = vld [vmem:[#allocation5 + $0x40] sm:$0xff]  ;;  %v496_v24 = vld [vmem:[#allocation7 + $0x30] sm:$0xff]  ;;  %s1418_s24 = sshll.u32 %s1556_s16, 4  ;;  %s1419_s24 = int_to_ptr.vmem [resolvable:$false] %s1418_s24 }
  0x8d   : > { %1146 = vmatprep.subr.bf16.mxu1 %v1145_v13  ;;  %v401_v22 = vld [vmem:[#allocation5 + $0x48] sm:$0xff]  ;;  %v1153_v23 = vpack.c.bf16 %v495_v19, %v494_v18  ;;  %v497_v25 = vld [vmem:[#allocation7 + $0x38] sm:$0xff]  ;;  %v402_v27 = vld [vmem:[#allocation5 + $0x50] sm:$0xff]  ;;  %v590_v11 = vshrl.u32 %v589_v10, 7  ;;  %p1416_p3 = pnand %p1415_p0, %p1761_p5  ;;  %s1420_s20 = scalar_lea.vmem %s1419_s24, 512 }
  0x8e   : > { %1148 = vmatpush3.bf16.msra.mxu1 %v1145_v13  ;;  %v1129_v26 = vpack.c.bf16 %v401_v22, %v400_v21  ;;  %v403_v28 = vld [vmem:[#allocation5 + $0x58] sm:$0xff]  ;;  %v1157_v29 = vpack.c.bf16 %v497_v25, %v496_v24  ;;  %v498_v30 = vld [vmem:[#allocation7 + $0x40] sm:$0xff]  ;;  %v499_v31 = vld [vmem:[#allocation7 + $0x48] sm:$0xff]  ;;  %p1421_p11 = scmp.lt.s32.totalorder %s1848_s21, %s1419_s24  ;;  %p1422_p1 = scmp.lt.s32.totalorder %s1420_s20, %s1414_s19 }
  0x8f   : > { %1120 = vmatpush3.bf16.msra.mxu0 %v1117_v5  ;;  %1150 = vmatprep.subr.bf16.mxu1 %v1149_v17  ;;  %v1133_v32 = vpack.c.bf16 %v403_v28, %v402_v27  ;;  %v404_v33 = vld [vmem:[#allocation5 + $0x60] sm:$0xff]  ;;  %v405_v34 = vld [vmem:[#allocation5 + $0x68] sm:$0xff]  ;;  %v1161_v35 = vpack.c.bf16 %v499_v31, %v498_v30  ;;  %v500_v36 = vld [vmem:[#allocation7 + $0x50] sm:$0xff]  ;;  %v591_v12 = vadd.s32 8, %v590_v11  ;;  %p1417_p7 = pneg %p1416_p3 }
  0x90   : > { %1122 = vmatprep.subr.bf16.mxu0 %v1121_v9  ;;  %v501_v37 = vld [vmem:[#allocation7 + $0x58] sm:$0xff]  ;;  %v1137_v38 = vpack.c.bf16 %v405_v34, %v404_v33  ;;  %v406_v39 = vld [vmem:[#allocation5 + $0x70] sm:$0xff]  ;;  %v502_v42 = vld [vmem:[#allocation7 + $0x60] sm:$0xff]  ;;  %p1423_p2 = por %p1422_p1, %p1421_p11 }
  0x91   : > { %v407_v40 = vld [vmem:[#allocation5 + $0x78] sm:$0xff]  ;;  %v1165_v41 = vpack.c.bf16 %v501_v37, %v500_v36  ;;  %v503_v43 = vld [vmem:[#allocation7 + $0x68] sm:$0xff]  ;;  %v607_v45 = vld [vmem:[#allocation8] sm:$0xff] }
  0x92   : > { %1152 = vmatpush3.bf16.msra.mxu1 %v1149_v17  ;;  %v1141_v44 = vpack.c.bf16 %v407_v40, %v406_v39  ;;  %v608_v46 = vld [vmem:[#allocation8 + $0x8] sm:$0xff]  ;;  %v1169_v47 = vpack.c.bf16 %v503_v43, %v502_v42  ;;  %v504_v48 = vld [vmem:[#allocation7 + $0x70] sm:$0xff]  ;;  %v505_v49 = vld [vmem:[#allocation7 + $0x78] sm:$0xff]  ;;  %p1424_p4 = pnand %p1423_p2, %p1417_p7 }
  0x93   : > { %1124 = vmatpush3.bf16.msra.mxu0 %v1121_v9  ;;  %1154 = vmatprep.subr.bf16.mxu1 %v1153_v23  ;;  %v1177_v50 = vpack.c.bf16 %v608_v46, %v607_v45  ;;  %v609_v51 = vld [vmem:[#allocation8 + $0x10] sm:$0xff]  ;;  %v610_v52 = vld [vmem:[#allocation8 + $0x18] sm:$0xff]  ;;  %v1173_v53 = vpack.c.bf16 %v505_v49, %v504_v48  ;;  %v611_v56 = vld [vmem:[#allocation8 + $0x20] sm:$0xff] }
  0x94   : > { %1126 = vmatprep.subr.bf16.mxu0 %v1125_v20  ;;  %v391_v54 = vld [vmem:[%s331_s15 + $0x8] sm:$0xff]  ;;  %v1181_v55 = vpack.c.bf16 %v610_v52, %v609_v51  ;;  %v613_v59 = vld [vmem:[#allocation8 + $0x30] sm:$0xff]  ;;  %v615_v62 = vld [vmem:[#allocation8 + $0x40] sm:$0xff] }
  0x95   : > { %v612_v57 = vld [vmem:[#allocation8 + $0x28] sm:$0xff]  ;;  %v614_v60 = vld [vmem:[#allocation8 + $0x38] sm:$0xff]  ;;  %v617_v1 = vld [vmem:[#allocation8 + $0x50] sm:$0xff] }
  0x96   : > { %1156 = vmatpush3.bf16.msra.mxu1 %v1153_v23  ;;  %v1185_v58 = vpack.c.bf16 %v612_v57, %v611_v56  ;;  %v1189_v61 = vpack.c.bf16 %v614_v60, %v613_v59  ;;  %v616_v63 = vld [vmem:[#allocation8 + $0x48] sm:$0xff]  ;;  %v618_v2 = vld [vmem:[#allocation8 + $0x58] sm:$0xff]  ;;  %v619_v4 = vld [vmem:[#allocation8 + $0x60] sm:$0xff] }
  0x97   : > { %1128 = vmatpush3.bf16.msra.mxu0 %v1125_v20  ;;  %1158 = vmatprep.subr.bf16.mxu1 %v1157_v29  ;;  %v1193_v0 = vpack.c.bf16 %v616_v63, %v615_v62  ;;  %v1197_v3 = vpack.c.bf16 %v618_v2, %v617_v1  ;;  %v620_v5 = vld [vmem:[#allocation8 + $0x68] sm:$0xff]  ;;  %v621_v7 = vld [vmem:[#allocation8 + $0x70] sm:$0xff]  ;;  %v622_v8 = vld [vmem:[#allocation8 + $0x78] sm:$0xff] }
  0x98   : > { %1130 = vmatprep.subr.bf16.mxu0 %v1129_v26  ;;  %v1201_v6 = vpack.c.bf16 %v620_v5, %v619_v4  ;;  %v1205_v9 = vpack.c.bf16 %v622_v8, %v621_v7  ;;  %v936_v13 = vld [vmem:[%s1988_s2] ss:$0 sm:$0xff] }
  0x99   : > { %v937_v21 = vld [vmem:[%s1990_s4] ss:$0 sm:$0xff] }
  0x9a   : > { %1160 = vmatpush3.bf16.msra.mxu1 %v1157_v29 }
  0x9b   : > { %1132 = vmatpush3.bf16.msra.mxu0 %v1129_v26  ;;  %1162 = vmatprep.subr.bf16.mxu1 %v1161_v35 }
  0x9c   : > { %1134 = vmatprep.subr.bf16.mxu0 %v1133_v32 }
  0x9e   : > { %1164 = vmatpush3.bf16.msra.mxu1 %v1161_v35 }
  0x9f   : > { %1136 = vmatpush3.bf16.msra.mxu0 %v1133_v32  ;;  %1166 = vmatprep.subr.bf16.mxu1 %v1165_v41 }
  0xa0   : > { %1138 = vmatprep.subr.bf16.mxu0 %v1137_v38 }
  0xa2   : > { %1168 = vmatpush3.bf16.msra.mxu1 %v1165_v41 }
  0xa3   : > { %1140 = vmatpush3.bf16.msra.mxu0 %v1137_v38  ;;  %1170 = vmatprep.subr.bf16.mxu1 %v1169_v47 }
  0xa4   : > { %1142 = vmatprep.subr.bf16.mxu0 %v1141_v44 }
  0xa6   : > { %1172 = vmatpush3.bf16.msra.mxu1 %v1169_v47 }
  0xa7   : > { %1144 = vmatpush3.bf16.msra.mxu0 %v1141_v44  ;;  %1174 = vmatprep.subr.bf16.mxu1 %v1173_v53 }
  0xa8   : > { %1178 = vmatprep.subr.bf16.mxu0 %v1177_v50 }
  0xaa   : > { %1041 = vmatmul.mubr.f32.vlgmr.msra.gmra.mrb[0].mxu0 %v391_v54  ;;  %1176 = vmatpush3.bf16.msra.mxu1 %v1173_v53 }
  0xab   : > { %1180 = vmatpush3.bf16.msra.mxu0 %v1177_v50  ;;  %1110 = vmatprep.mubr.f32.mxu0 %v1833_v14  ;;  %v592_v14 = vstv %s938_s11 }
  0xac   : > { %1182 = vmatprep.subr.bf16.mxu0 %v1181_v55  ;;  %v594_v18 = vadd.s32 %v592_v14, %v591_v12  ;;  %v593_v20 = vadd.s32 %v592_v14, %v590_v11 }
  0xad   : > { %1076 = vmatmul.mubr.f32.vlgmr.msra.gmra.mrb[0].mxu1 %v391_v54 }
  0xae   : > { %vm596_vm0 = vcmp.lt.s32.totalorder %v594_v18, 40 }
  0xaf   : > { %1184 = vmatpush3.bf16.msra.mxu0 %v1181_v55 }
  0xb0   : > { %1186 = vmatprep.subr.bf16.mxu0 %v1185_v58 }
  0xb3   : > { %1188 = vmatpush3.bf16.msra.mxu0 %v1185_v58 }
  0xb4   : > { %1190 = vmatprep.subr.bf16.mxu0 %v1189_v61 }
  0xb7   : > { %1192 = vmatpush3.bf16.msra.mxu0 %v1189_v61 }
  0xb8   : > { %1194 = vmatprep.subr.bf16.mxu0 %v1193_v0 }
  0xbb   : > { %1196 = vmatpush3.bf16.msra.mxu0 %v1193_v0 }
  0xbc   : > { %1198 = vmatprep.subr.bf16.mxu0 %v1197_v3 }
  0xbf   : > { %1200 = vmatpush3.bf16.msra.mxu0 %v1197_v3 }
  0xc0   : > { %1202 = vmatprep.subr.bf16.mxu0 %v1201_v6 }
  0xc3   : > { %1204 = vmatpush3.bf16.msra.mxu0 %v1201_v6 }
  0xc4   : > { %1206 = vmatprep.subr.bf16.mxu0 %v1205_v9 }
  0xc7   : > { %1208 = vmatpush3.bf16.msra.mxu0 %v1205_v9 }
  0xca   : > { %1111 = vmatmul.mubr.f32.vlgmr.msra.gmra.mrb[2].mxu0 %v391_v54 }
 0x17d   : > { %v1042_v15 = vpop.f32.mrb[0].mxu0 }
 0x17e   : > { %v487_v16 = vadd.f32 %v1042_v15, %v936_v13  ;;  %v481_v17 = vpop.f32.mrb[1].mxu0 }
 0x17f   : > { %v482_v19 = vadd.f32 %v936_v13, %v481_v17 }
 0x180   : > { %604 = vst [vmem:[%s371_s13 + $0x8] sm:$0xff] %v487_v16  ;;  %v1077_v22 = vpop.f32.mrb[0].mxu1 }
 0x181   : > { %603 = vst [vmem:[%s371_s13] sm:$0xff] %v482_v19 }
 0x182   : > { %1427 = shalt.err (!%p1424_p4)
}
 0x183   : > { %s1428_s13 = scalar_lea.hbm %s1854_s25, 256  ;;  %s1432_s16 = scalar_lea.hbm %s1992_s6, 768 }
 0x184   : > { %p1429_p9 = scmp.ne.s32.totalorder %s1854_s25, %s1428_s13  ;;  %p1433_p8 = scmp.lt.u32.totalorder %s1854_s25, %s1992_s6 }
 0x185   : > { %p1434_p12 = scmp.lt.u32.totalorder %s1432_s16, %s1428_s13  ;;  %p1436_p0 = scmp.lt.u32.totalorder %s1428_s13, %s1854_s25 }
 0x186   : > { %p1430_p13 = pnand %p1429_p9, %p1761_p5 }
 0x187   : > { %p1435_p6 = por %p1434_p12, %p1433_p8 }
 0x188   : > { %p1431_p10 = pneg %p1430_p13 }
 0x189   : > { %p1437_p3 = por %p1436_p0, %p1435_p6 }
 0x18b   : > { %p1438_p7 = pnand %p1437_p3, %p1431_p10 }
 0x18d   : > { %1441 = shalt.err (!%p1438_p7)
}
 0x18e   : > { %s1557_s19 = smov 128   ;;  %s1558_s11 = smov 8   ;;  %v585_v23 = vadd.f32 %v1077_v22, %v937_v21  ;;  %v579_v24 = vpop.f32.mrb[1].mxu1  ;;  %vm595_vm1 = vcmp.lt.s32.totalorder %v593_v20, 40 }
 0x18f   : > { %1223 = dma.vmem_to_hbm [thread:$0]  (%p1761_p5), %s1848_s21, 256, %s1854_s25, %s701_s22, %s1557_s19, %s1557_s19, %s1558_s11   ;;  %v580_v25 = vadd.f32 %v937_v21, %v579_v24 }
 0x190   : > { %s2017_s15 = sshll.u32 %s1860_s27, 4  ;;  %v602_v26 = vsel %vm596_vm0, %v585_v23, 0.0  ;;  %s1900_s17 = scalar_lea.hbm %s1993_s7, %s1846_s18  ;;  %s1893_s15 = int_to_ptr.vmem [resolvable:$true] %s2017_s15 }
 0x191   : > { %606 = vst [vmem:[%s1860_s27 + $0x8] sm:$0xff] %v602_v26  ;;  %v601_v27 = vsel %vm595_vm1, %v580_v25, 0.0  ;;  %s2018_s10 = sand.u32 1, %s1627_s9   ;;  %s1442_s25 = scalar_lea.vmem %s1893_s15, 256 }
 0x192   : > { %605 = vst [vmem:[%s1860_s27] sm:$0xff] %v601_v27  ;;  %s1906_s21 = scalar_lea.sflag [#allocation12], %s2018_s10  ;;  %p1443_p11 = scmp.ne.s32.totalorder %s1893_s15, %s1442_s25 }
 0x193   : > { %s1559_s22 = smov [#allocation11]  }
 0x194   : > { %p1444_p1 = pnand %p1443_p11, %p1761_p5  ;;  %s1446_s16 = sshll.u32 %s1559_s22, 4  ;;  %s1447_s16 = int_to_ptr.vmem [resolvable:$false] %s1446_s16 }
 0x195   : > { %s1448_s24 = scalar_lea.vmem %s1447_s16, 512  ;;  %p1449_p4 = scmp.lt.s32.totalorder %s1893_s15, %s1447_s16 }
 0x196   : > { %p1445_p2 = pneg %p1444_p1  ;;  %p1450_p9 = scmp.lt.s32.totalorder %s1448_s24, %s1442_s25 }
 0x198   : > { %p1451_p13 = por %p1450_p9, %p1449_p4 }
 0x19a   : > { %p1452_p10 = pnand %p1451_p13, %p1445_p2 }
 0x19c   : > { %1455 = shalt.err (!%p1452_p10)
}
 0x19d   : > { %s1456_s9 = scalar_lea.hbm %s1900_s17, 256  ;;  %s1460_s13 = scalar_lea.hbm %s1993_s7, 768 }
 0x19e   : > { %p1457_p8 = scmp.ne.s32.totalorder %s1900_s17, %s1456_s9  ;;  %p1461_p0 = scmp.lt.u32.totalorder %s1900_s17, %s1993_s7 }
 0x19f   : > { %p1462_p3 = scmp.lt.u32.totalorder %s1460_s13, %s1456_s9  ;;  %p1464_p11 = scmp.lt.u32.totalorder %s1456_s9, %s1900_s17 }
 0x1a0   : > { %p1458_p12 = pnand %p1457_p8, %p1761_p5 }
 0x1a1   : > { %p1463_p7 = por %p1462_p3, %p1461_p0 }
 0x1a2   : > { %p1459_p6 = pneg %p1458_p12 }
 0x1a3   : > { %p1465_p1 = por %p1464_p11, %p1463_p7 }
 0x1a5   : > { %p1466_p2 = pnand %p1465_p1, %p1459_p6 }
 0x1a7   : > { %1469 = shalt.err (!%p1466_p2)
}
 0x1a8   : > { %1224 = dma.vmem_to_hbm [thread:$0]  (%p1761_p5), %s1893_s15, 256, %s1900_s17, %s1906_s21, %s1557_s19, %s1557_s19, %s1558_s11   ;;  %v1112_v28 = vpop.f32.mrb[2].mxu0 }
 0x1a9   : > { %s385_s25 = scalar_lea.vmem [#allocation13], %s1815_s14  ;;  %s1940_s27 = scalar_lea.hbm %s1994_s8, %s1846_s18  ;;  %v689_v29 = vpop.f32.mrb[3].mxu0 }
 0x1aa   : > { %s756_s16 = sshll.u32 %s385_s25, 4  ;;  %699 = vst [vmem:[%s385_s25 + $0x8] sm:$0xff] %v1112_v28  ;;  %698 = vst [vmem:[%s385_s25] sm:$0xff] %v689_v29  ;;  %s1560_s14 = smov [#allocation13]   ;;  %s1934_s16 = int_to_ptr.vmem [resolvable:$true] %s756_s16 }
 0x1ab   : > { %s1470_s20 = scalar_lea.vmem %s1934_s16, 256  ;;  %s1474_s15 = sshll.u32 %s1560_s14, 4  ;;  %s1475_s15 = int_to_ptr.vmem [resolvable:$false] %s1474_s15 }
 0x1ac   : > { %p1471_p4 = scmp.ne.s32.totalorder %s1934_s16, %s1470_s20  ;;  %s1476_s17 = scalar_lea.vmem %s1475_s15, 512 }
 0x1ad   : > { %p1477_p10 = scmp.lt.s32.totalorder %s1934_s16, %s1475_s15  ;;  %p1478_p8 = scmp.lt.s32.totalorder %s1476_s17, %s1470_s20 }
 0x1ae   : > { %p1472_p9 = pnand %p1471_p4, %p1761_p5 }
 0x1af   : > { %p1479_p12 = por %p1478_p8, %p1477_p10 }
 0x1b0   : > { %p1473_p13 = pneg %p1472_p9 }
 0x1b2   : > { %p1480_p6 = pnand %p1479_p12, %p1473_p13 }
 0x1b4   : > { %1483 = shalt.err (!%p1480_p6)
}
 0x1b5   : > { %s1484_s18 = scalar_lea.hbm %s1940_s27, 256  ;;  %s1488_s22 = scalar_lea.hbm %s1994_s8, 768 }
 0x1b6   : > { %p1485_p0 = scmp.ne.s32.totalorder %s1940_s27, %s1484_s18  ;;  %p1489_p11 = scmp.lt.u32.totalorder %s1940_s27, %s1994_s8 }
 0x1b7   : > { %p1490_p1 = scmp.lt.u32.totalorder %s1488_s22, %s1484_s18  ;;  %p1492_p4 = scmp.lt.u32.totalorder %s1484_s18, %s1940_s27 }
 0x1b8   : > { %p1486_p3 = pnand %p1485_p0, %p1761_p5 }
 0x1b9   : > { %p1491_p2 = por %p1490_p1, %p1489_p11 }
 0x1ba   : > { %p1487_p7 = pneg %p1486_p3 }
 0x1bb   : > { %p1493_p9 = por %p1492_p4, %p1491_p2 }
 0x1bd   : > { %p1494_p13 = pnand %p1493_p9, %p1487_p7 }
 0x1bf   : > { %1497 = shalt.err (!%p1494_p13)
}
 0x1c0   : > { %1225 = dma.vmem_to_hbm [thread:$0]  (%p1761_p5), %s1934_s16, 256, %s1940_s27, %s1906_s21, %s1557_s19, %s1557_s19, %s1558_s11  }
 0x1c1 PF: > { %s2019_s9 = sld [smem:[#allocation19_spill]]  ;;  %s2020_s20 = sld [smem:[#allocation20_spill]] }
 0x1c2   : > { %p1260_p10 = scmp.ge.s32.totalorder %s1548_s30, 2 }
 0x1c7   : > { %s771_s14 = sand.u32 1, %s2019_s9   ;;  %p2021_p8 = scmp.ne.s32.totalorder %s2020_s20, 0 }
 0x1c8   : > { %s772_s15 = scalar_lea.sflag [#allocation4], %s771_s14 }
 0x1c9   : > { %p1244_p12 = pnand %p1260_p10, %p2021_p8 }
 0x1cb   : > { %1527 = dma.done.wait (!%p1244_p12), %s772_s15, 256  }
 0x1cc   : > { %1529 = vsyncadd (!%p1244_p12), %s772_s15, 4294967040  ;;  %s2022_s23 = sadd.s32 4294967294, %s1548_s30  }
 0x1cd   : > { %s780_s17 = sand.u32 1, %s2022_s23  }
 0x1ce   : > { %s781_s18 = scalar_lea.sflag [#allocation12], %s780_s17 }
 0x1cf   : > { %1531 = dma.done.wait (!%p1244_p12), %s781_s18, 512  }
 0x1d0   : > { %1533 = vsyncadd (!%p1244_p12), %s781_s18, 4294966784  ;;  %p27_p5 = scmp.ge.s32.totalorder %s1747_s26, 5   ;;  %s2023_s27 = smov %s1540_s28 }
 0x1d1   : > { %s2024_s28 = smov %s1544_s29  ;;  %s2025_s29 = smov %s1757_s12 }
 0x1d2   : > { %s2026_s30 = smov %s1747_s26  ;;  %29 = sbr.rel (!%p27_p5) target bundleno = 9 (0x9), region = 133 }
 0x1d9   :  { %795 = vsyncpa [#allocation3], 1 }
 0x1da   :  { %797 = vsyncpa [#allocation3 + $0x1], 1 }
 0x1db   :  { %798 = vsyncpa [#allocation6], 1 }
 0x1dc   :  { %799 = vsyncpa [#allocation9], 1 }
 0x1dd   :  { %800 = vsyncpa [#allocation4], 1 }
 0x1de   :  { %802 = vsyncpa [#allocation4 + $0x1], 1 }
 0x1df   :  { %803 = vsyncpa [#allocation12], 1 }
 0x1e0   :  { %805 = vsyncpa [#allocation12 + $0x1], 1 }

</bundles_post_ra>
